<compile_context>
chip_gen: v7x
topology: tpu7x:2x2x1
jax: 0.10.0
libtpu: 0.0.40
codegen_flags: <defaults>
</compile_context>

<pallas_src>
import jax
import jax.numpy as jnp
from jax.experimental import pallas as pl
from jax.experimental.pallas import tpu as pltpu


def _round_up(x, m):
    return ((x + m - 1) // m) * m


def _tpu_generation():
    """Best-effort TPU generation (5, 6, 7). Falls back to 6 (conservative)."""
    try:
        kind = jax.devices()[0].device_kind.lower()
    except Exception:
        return 6
    for g in (7, 6, 5):
        if "v%d" % g in kind:
            return g
    return 6


def _vmem_budget_bytes(gen):
    """Tile budget per TensorCore, generation-aware (feedback #6/#7)."""
    if gen <= 5:
        return 12 << 20        # v5e: 16 MiB default scoped VMEM
    if gen == 6:
        return 24 << 20        # v6e: 128 MiB physical
    return 20 << 20            # v7x: 64 MiB physical per TC, 2 TCs may be active


# ----------------------------------------------------------------------------
# Pallas kernel: fused input projection + GRU recurrence over a time block.
#
# grid = (n_bchunks, n_tblocks); axis 0 = independent chain chunks ("parallel",
# only >1 on v7x), axis 1 = dilated time blocks ("arbitrary", sequential).
#
# x_ref    : (Tblk, Bc, Dinp) f32   dilated inputs (lane-padded features)
# wih_ref  : (Dinp, 3Hp)     bf16   pre-transposed input->gates weight
# whh_ref  : (Hp, 3Hp)       bf16   pre-transposed hidden->gates weight
# bias_ref : (1, 3Hp)        f32    fused bias (b_ir+b_hr, b_iz+b_hz, b_in)
# bhn_ref  : (1, Hp)         f32    b_hn (stays inside r*(h_n + b_hn))
# out_ref  : (Tblk, Bc, Hp)  f32    per-timestep output (== new hidden)
# gi_sc    : VMEM (Tblk, Bc, 3Hp) f32   per-block input-gate slab
# h_sc     : VMEM (Bc, Hp) f32          recurrent state carried across blocks
# ----------------------------------------------------------------------------
def _dilated_gru_kernel(x_ref, wih_ref, whh_ref, bias_ref, bhn_ref,
                        out_ref, gi_sc, h_sc):
    Tblk, Bc, Dinp = x_ref.shape
    Hp = h_sc.shape[-1]

    @pl.when(pl.program_id(1) == 0)          # new chain chunk -> reset state
    def _():
        h_sc[...] = jnp.zeros_like(h_sc)

    # Fused input projection for the whole time block: one large-M bf16 matmul
    # (f32 accumulation) straight into VMEM scratch -> no HBM gi intermediate.
    x2d = x_ref[...].reshape(Tblk * Bc, Dinp).astype(jnp.bfloat16)
    gi = jnp.dot(x2d, wih_ref[...], preferred_element_type=jnp.float32)
    gi_sc[...] = (gi + bias_ref[...]).reshape(Tblk, Bc, 3 * Hp)

    # Hoisted loop constants.
    bhn_b = jnp.broadcast_to(bhn_ref[...], (Bc, Hp))      # hoisted broadcast
    hold_whh = (Hp * 3 * Hp * 2) <= (96 << 10)            # bf16 whh fits vregs
    whh_v = whh_ref[...] if hold_whh else None

    def step(i, h):
        gi_t = gi_sc[i]                                    # (Bc, 3Hp) f32
        whh = whh_v if hold_whh else whh_ref[...]
        gh = jnp.dot(h.astype(jnp.bfloat16), whh,
                     preferred_element_type=jnp.float32)
        r = jax.nn.sigmoid(gi_t[:, 0:Hp] + gh[:, 0:Hp])
        z = jax.nn.sigmoid(gi_t[:, Hp:2 * Hp] + gh[:, Hp:2 * Hp])
        n = jnp.tanh(gi_t[:, 2 * Hp:3 * Hp] + r * (gh[:, 2 * Hp:3 * Hp] + bhn_b))
        h_new = (1.0 - z) * n + z * h
        out_ref[i] = h_new
        return h_new

    unroll = True if Tblk <= 16 else 8
    h_final = jax.lax.fori_loop(0, Tblk, step, h_sc[...], unroll=unroll)
    h_sc[...] = h_final


def _prepare_gru_params(w_ih, w_hh, b_ih, b_hh):
    """Pre-transpose + zero-pad PyTorch-layout GRUCell params (weights -> bf16)."""
    H = w_hh.shape[1]
    in_dim = w_ih.shape[1]
    Hp = _round_up(H, 128)
    Dinp = _round_up(in_dim, 128)

    def pad_gate_cols(w_t, rows):             # (K, 3H) -> (rows, 3Hp), gates split
        K = w_t.shape[0]
        out = jnp.zeros((rows, 3 * Hp), jnp.float32)
        for g in range(3):
            out = out.at[:K, g * Hp:g * Hp + H].set(w_t[:, g * H:(g + 1) * H])
        return out

    wih_T = pad_gate_cols(jnp.transpose(w_ih).astype(jnp.float32), Dinp)
    whh_T = pad_gate_cols(jnp.transpose(w_hh).astype(jnp.float32), Hp)

    # Fused bias for the projection: r: b_ir+b_hr, z: b_iz+b_hz, n: b_in
    # (b_hn stays inside the r*(.) term, PyTorch GRU semantics).
    bias_proj = jnp.zeros((1, 3 * Hp), jnp.float32)
    bias_proj = bias_proj.at[0, 0 * Hp:0 * Hp + H].set(b_ih[0:H] + b_hh[0:H])
    bias_proj = bias_proj.at[0, 1 * Hp:1 * Hp + H].set(b_ih[H:2 * H] + b_hh[H:2 * H])
    bias_proj = bias_proj.at[0, 2 * Hp:2 * Hp + H].set(b_ih[2 * H:3 * H])
    bhn = jnp.zeros((1, Hp), jnp.float32).at[:, :H].set(b_hh[2 * H:3 * H])

    return dict(wih_T=wih_T.astype(jnp.bfloat16),
                whh_T=whh_T.astype(jnp.bfloat16),
                bias_proj=bias_proj, bhn=bhn,
                H=H, Hp=Hp, in_dim=in_dim, Dinp=Dinp)


def _dilated_gru_layer(x_tm, p, rate, gen):
    """x_tm: (S, B, Dinp) time-major f32, feature dim already lane-padded.
    Returns (y (S, B, Hp) lane-padded, hlast (rate*B, H))."""
    S, B, Dinp = x_tm.shape
    H, Hp = p["H"], p["Hp"]
    assert Dinp == p["Dinp"], (Dinp, p["Dinp"])

    Sp = _round_up(S, rate)
    Td = Sp // rate
    Bd = rate * B
    Bdp = _round_up(max(Bd, 8), 8)            # pad chains to sublane multiple

    # Chain split only where it can actually run concurrently (v7x, 2 TCs) and
    # the per-core chunk keeps >= 64 chains; single chunk on v5e/v6e.
    n_bchunks = 2 if (gen >= 7 and Bdp >= 128 and Bdp % 16 == 0) else 1
    Bchunk = Bdp // n_bchunks

    # Generation-aware VMEM budget -> time-block size (balanced to minimize the
    # padded tail block).
    budget = _vmem_budget_bytes(gen)
    fixed = (2 * (Dinp * 3 * Hp + Hp * 3 * Hp) * 2     # bf16 weights, 2 buffers
             + Bchunk * Hp * 4                          # h scratch
             + 8 * 4 * Hp * 4)                          # biases (generous)
    per_t = Bchunk * 4 * (2 * Dinp + 2 * Hp + 3 * Hp)   # x(2x) + out(2x) + gi scratch
    tblk_max = int(max(1, min(Td, (budget - fixed) // max(1, per_t))))
    n_tblocks = pl.cdiv(Td, tblk_max)
    Tblk = pl.cdiv(Td, n_tblocks)
    n_tblocks = pl.cdiv(Td, Tblk)
    Tpad = n_tblocks * Tblk
    Sp_pad = Tpad * rate

    # Zero-pad time, build dilated layout (row = phase*B + b), pad chain rows.
    x_p = jnp.pad(x_tm, ((0, Sp_pad - S), (0, 0), (0, 0)))
    x_d = x_p.reshape(Tpad, rate, B, Dinp).reshape(Tpad, Bd, Dinp)
    if Bdp > Bd:
        x_d = jnp.pad(x_d, ((0, 0), (0, Bdp - Bd), (0, 0)))

    vmem_limit = int(min(budget + (12 << 20), 48 << 20))

    out = pl.pallas_call(
        _dilated_gru_kernel,
        out_shape=jax.ShapeDtypeStruct((Tpad, Bdp, Hp), jnp.float32),
        grid_spec=pltpu.PrefetchScalarGridSpec(
            num_scalar_prefetch=0,
            grid=(n_bchunks, n_tblocks),
            in_specs=[
                pl.BlockSpec((Tblk, Bchunk, Dinp), lambda c, t: (t, c, 0)),
                pl.BlockSpec((Dinp, 3 * Hp), lambda c, t: (0, 0)),
                pl.BlockSpec((Hp, 3 * Hp), lambda c, t: (0, 0)),
                pl.BlockSpec((1, 3 * Hp), lambda c, t: (0, 0)),
                pl.BlockSpec((1, Hp), lambda c, t: (0, 0)),
            ],
            out_specs=pl.BlockSpec((Tblk, Bchunk, Hp), lambda c, t: (t, c, 0)),
            scratch_shapes=[
                pltpu.VMEM((Tblk, Bchunk, 3 * Hp), jnp.float32),   # gi slab
                pltpu.VMEM((Bchunk, Hp), jnp.float32),             # recurrent h
            ],
        ),
        compiler_params=pltpu.CompilerParams(
            dimension_semantics=("parallel", "arbitrary"),
            vmem_limit_bytes=vmem_limit),
    )(x_d, p["wih_T"], p["whh_T"], p["bias_proj"], p["bhn"])

    # Final hidden of every interleaved chain = output at last real dilated step
    # (matches the reference dRNN: padded trailing timesteps are still stepped).
    hlast = out[Td - 1, :Bd, :H]                                    # (rate*B, H)

    # Un-dilate (stay time-major, keep lane padding), drop chain/time padding.
    y = out[:Td, :Bd, :].reshape(Td, rate, B, Hp).reshape(Sp, B, Hp)[:S]
    return y, hlast


class Encoder:
    """JAX/Pallas equivalent of DTCR Encoder (multi_dRNN_with_dilations, GRU cells)."""

    def __init__(self, hidden_structs, dilations, input_dims,
                 cell_type="GRU", batch_first=True, device=None, seed=0):
        assert cell_type == "GRU", "only GRU cells implemented"
        assert len(hidden_structs) == len(dilations)
        self.hidden_structs = list(hidden_structs)
        self.dilations = list(dilations)
        self.batch_first = batch_first
        self._gen = _tpu_generation()

        # Deterministic parameter init (PyTorch GRUCell style: U(-1/sqrt(H), 1/sqrt(H))).
        key = jax.random.PRNGKey(seed)
        self.layers = []
        in_dim = input_dims
        for H in hidden_structs:
            key, k1, k2, k3, k4 = jax.random.split(key, 5)
            bound = 1.0 / (H ** 0.5)
            w_ih = jax.random.uniform(k1, (3 * H, in_dim), jnp.float32, -bound, bound)
            w_hh = jax.random.uniform(k2, (3 * H, H), jnp.float32, -bound, bound)
            b_ih = jax.random.uniform(k3, (3 * H,), jnp.float32, -bound, bound)
            b_hh = jax.random.uniform(k4, (3 * H,), jnp.float32, -bound, bound)
            self.layers.append(_prepare_gru_params(w_ih, w_hh, b_ih, b_hh))
            in_dim = H

    def __call__(self, inputs):
        # inputs: (B, S, D) if batch_first else (S, B, D). Internally time-major,
        # feature dim padded once to a lane multiple and kept padded between layers.
        x_tm = jnp.transpose(inputs, (1, 0, 2)) if self.batch_first else inputs
        x_tm = x_tm.astype(jnp.float32)
        d0 = self.layers[0]["Dinp"]
        if x_tm.shape[-1] < d0:
            x_tm = jnp.pad(x_tm, ((0, 0), (0, 0), (0, d0 - x_tm.shape[-1])))

        hiddens = []
        for p, rate in zip(self.layers, self.dilations):
            x_tm, h = _dilated_gru_layer(x_tm, p, rate, self._gen)
            hiddens.append(h)

        x_tm = x_tm[..., :self.hidden_structs[-1]]
        outputs = jnp.transpose(x_tm, (1, 0, 2)) if self.batch_first else x_tm
        return outputs, hiddens


if __name__ == "__main__":
    # Small, forward-consistent shapes.
    batch, seq, input_dims = 2, 8, 4
    hidden_structs = [32, 32, 32]
    dilations = [1, 2, 4]

    key = jax.random.PRNGKey(0)
    x = jax.random.normal(key, (batch, seq, input_dims), dtype=jnp.float32)

    enc = Encoder(hidden_structs, dilations, input_dims,
                  cell_type="GRU", batch_first=True, seed=0)
    outputs, hiddens = enc(x)

    jax.block_until_ready(outputs)
    for h in hiddens:
        jax.block_until_ready(h)

    assert outputs.shape == (batch, seq, hidden_structs[-1])
    assert [tuple(h.shape) for h in hiddens] == [
        (d * batch, hs) for d, hs in zip(dilations, hidden_structs)
    ]
    assert bool(jnp.all(jnp.isfinite(outputs)))
    print("KERNEL_OK")
</pallas_src>

<mosaic_0001>
module attributes {stable_mosaic.version = 11 : i64} {
  func.func @_dilated_gru_kernel(%arg0: i32, %arg1: i32, %arg2: memref<8x8x128xf32, #tpu.memory_space<vmem>>, %arg3: memref<128x384xbf16, #tpu.memory_space<vmem>>, %arg4: memref<128x384xbf16, #tpu.memory_space<vmem>>, %arg5: memref<1x384xf32, #tpu.memory_space<vmem>>, %arg6: memref<1x128xf32, #tpu.memory_space<vmem>>, %arg7: memref<8x8x128xf32, #tpu.memory_space<vmem>>, %arg8: memref<8x8x384xf32, #tpu.memory_space<vmem>>, %arg9: memref<8x128xf32, #tpu.memory_space<vmem>>) attributes {dimension_semantics = [#tpu.dimension_semantics<parallel>, #tpu.dimension_semantics<arbitrary>], iteration_bounds = array<i64: 1, 1>, scalar_prefetch = 0 : i64, scratch_operands = 2 : i64, tpu.core_type = #tpu.core_type<tc>, window_params = [{transform_indices = @transform_0, window_bounds = array<i64: 8, 8, 128>}, {pipeline_mode = #tpu.pipeline_mode<synchronous>, transform_indices = @transform_1, window_bounds = array<i64: 128, 384>}, {pipeline_mode = #tpu.pipeline_mode<synchronous>, transform_indices = @transform_2, window_bounds = array<i64: 128, 384>}, {pipeline_mode = #tpu.pipeline_mode<synchronous>, transform_indices = @transform_3, window_bounds = array<i64: 1, 384>}, {pipeline_mode = #tpu.pipeline_mode<synchronous>, transform_indices = @transform_4, window_bounds = array<i64: 1, 128>}, {transform_indices = @transform_5, window_bounds = array<i64: 8, 8, 128>}]} {
    %c0_i32 = arith.constant 0 : i32
    %0 = arith.cmpi eq, %arg1, %c0_i32 : i32
    %1 = arith.extui %0 : i1 to i32
    %c0_i32_0 = arith.constant 0 : i32
    %2 = arith.cmpi ne, %1, %c0_i32_0 : i32
    scf.if %2 {
      %cst_83 = arith.constant 0.000000e+00 : f32
      %307 = vector.broadcast %cst_83 : f32 to vector<8x128xf32>
      %c0_84 = arith.constant 0 : index
      %c0_85 = arith.constant 0 : index
      %308 = vector.load %arg9[%c0_84, %c0_85] : memref<8x128xf32, #tpu.memory_space<vmem>>, vector<8x128xf32>
      tpu.vector_store %arg9[%c0_84, %c0_85], %307 {strides = array<i32>} : memref<8x128xf32, #tpu.memory_space<vmem>>, vector<8x128xf32>,
    } else {
    }
    %c0 = arith.constant 0 : index
    %c0_1 = arith.constant 0 : index
    %c0_2 = arith.constant 0 : index
    %3 = vector.load %arg2[%c0, %c0_1, %c0_2] : memref<8x8x128xf32, #tpu.memory_space<vmem>>, vector<8x8x128xf32>
    %4 = vector.shape_cast %3 : vector<8x8x128xf32> to vector<64x128xf32>
    %5 = arith.truncf %4 : vector<64x128xf32> to vector<64x128xbf16>
    %c0_3 = arith.constant 0 : index
    %c0_4 = arith.constant 0 : index
    %6 = vector.load %arg3[%c0_3, %c0_4] : memref<128x384xbf16, #tpu.memory_space<vmem>>, vector<128x384xbf16>
    %cst = arith.constant dense<0.000000e+00> : vector<64x384xf32>
    %7 = tpu.matmul %5, %6, %cst {dimension_numbers = #tpu.dot_dimension_numbers<[1], [0], [0], [1], [0, 0, 1, 1], [], []>} : vector<64x128xbf16>, vector<128x384xbf16>, vector<64x384xf32> -> vector<64x384xf32>
    %c0_5 = arith.constant 0 : index
    %c0_6 = arith.constant 0 : index
    %8 = vector.load %arg5[%c0_5, %c0_6] : memref<1x384xf32, #tpu.memory_space<vmem>>, vector<1x384xf32>
    %9 = vector.broadcast %8 : vector<1x384xf32> to vector<64x384xf32>
    %10 = arith.addf %7, %9 : vector<64x384xf32>
    %11 = vector.shape_cast %10 : vector<64x384xf32> to vector<8x8x384xf32>
    %c0_7 = arith.constant 0 : index
    %c0_8 = arith.constant 0 : index
    %c0_9 = arith.constant 0 : index
    %12 = vector.load %arg8[%c0_7, %c0_8, %c0_9] : memref<8x8x384xf32, #tpu.memory_space<vmem>>, vector<8x8x384xf32>
    tpu.vector_store %arg8[%c0_7, %c0_8, %c0_9], %11 {strides = array<i32>} : memref<8x8x384xf32, #tpu.memory_space<vmem>>, vector<8x8x384xf32>,
    %c0_10 = arith.constant 0 : index
    %c0_11 = arith.constant 0 : index
    %13 = vector.load %arg6[%c0_10, %c0_11] : memref<1x128xf32, #tpu.memory_space<vmem>>, vector<1x128xf32>
    %14 = vector.shape_cast %13 : vector<1x128xf32> to vector<1x128xf32>
    %15 = vector.broadcast %14 : vector<1x128xf32> to vector<8x128xf32>
    %c0_12 = arith.constant 0 : index
    %c0_13 = arith.constant 0 : index
    %16 = vector.load %arg4[%c0_12, %c0_13] : memref<128x384xbf16, #tpu.memory_space<vmem>>, vector<128x384xbf16>
    %c0_14 = arith.constant 0 : index
    %c0_15 = arith.constant 0 : index
    %17 = vector.load %arg9[%c0_14, %c0_15] : memref<8x128xf32, #tpu.memory_space<vmem>>, vector<8x128xf32>
    %c0_i32_16 = arith.constant 0 : i32
    %18 = arith.index_cast %c0_i32_16 : i32 to index
    %c0_17 = arith.constant 0 : index
    %c0_18 = arith.constant 0 : index
    %19 = vector.load %arg8[%18, %c0_17, %c0_18] : memref<8x8x384xf32, #tpu.memory_space<vmem>>, vector<1x8x384xf32>
    %20 = vector.shape_cast %19 : vector<1x8x384xf32> to vector<8x384xf32>
    %21 = arith.truncf %17 : vector<8x128xf32> to vector<8x128xbf16>
    %cst_19 = arith.constant dense<0.000000e+00> : vector<8x384xf32>
    %22 = tpu.matmul %21, %16, %cst_19 {dimension_numbers = #tpu.dot_dimension_numbers<[1], [0], [0], [1], [0, 0, 1, 1], [], []>} : vector<8x128xbf16>, vector<128x384xbf16>, vector<8x384xf32> -> vector<8x384xf32>
    %23 = vector.extract_strided_slice %20 {offsets = [0, 0], sizes = [8, 128], strides = [1, 1]} : vector<8x384xf32> to vector<8x128xf32>
    %24 = vector.extract_strided_slice %22 {offsets = [0, 0], sizes = [8, 128], strides = [1, 1]} : vector<8x384xf32> to vector<8x128xf32>
    %25 = arith.addf %23, %24 : vector<8x128xf32>
    %26 = arith.negf %25 : vector<8x128xf32>
    %27 = math.exp %26 : vector<8x128xf32>
    %cst_20 = arith.constant 1.000000e+00 : f32
    %28 = vector.broadcast %cst_20 : f32 to vector<8x128xf32>
    %29 = arith.addf %28, %27 : vector<8x128xf32>
    %30 = arith.divf %28, %29 : vector<8x128xf32>
    %31 = vector.extract_strided_slice %20 {offsets = [0, 128], sizes = [8, 128], strides = [1, 1]} : vector<8x384xf32> to vector<8x128xf32>
    %32 = vector.extract_strided_slice %22 {offsets = [0, 128], sizes = [8, 128], strides = [1, 1]} : vector<8x384xf32> to vector<8x128xf32>
    %33 = arith.addf %31, %32 : vector<8x128xf32>
    %34 = arith.negf %33 : vector<8x128xf32>
    %35 = math.exp %34 : vector<8x128xf32>
    %cst_21 = arith.constant 1.000000e+00 : f32
    %36 = vector.broadcast %cst_21 : f32 to vector<8x128xf32>
    %37 = arith.addf %36, %35 : vector<8x128xf32>
    %38 = arith.divf %36, %37 : vector<8x128xf32>
    %39 = vector.extract_strided_slice %20 {offsets = [0, 256], sizes = [8, 128], strides = [1, 1]} : vector<8x384xf32> to vector<8x128xf32>
    %40 = vector.extract_strided_slice %22 {offsets = [0, 256], sizes = [8, 128], strides = [1, 1]} : vector<8x384xf32> to vector<8x128xf32>
    %41 = arith.addf %40, %15 : vector<8x128xf32>
    %42 = arith.mulf %30, %41 : vector<8x128xf32>
    %43 = arith.addf %39, %42 : vector<8x128xf32>
    %44 = math.tanh %43 : vector<8x128xf32>
    %cst_22 = arith.constant 1.000000e+00 : f32
    %45 = vector.broadcast %cst_22 : f32 to vector<8x128xf32>
    %46 = arith.subf %45, %38 : vector<8x128xf32>
    %47 = arith.mulf %46, %44 : vector<8x128xf32>
    %48 = arith.mulf %38, %17 : vector<8x128xf32>
    %49 = arith.addf %47, %48 : vector<8x128xf32>
    %50 = arith.index_cast %c0_i32_16 : i32 to index
    %c0_23 = arith.constant 0 : index
    %c0_24 = arith.constant 0 : index
    %51 = vector.load %arg7[%50, %c0_23, %c0_24] : memref<8x8x128xf32, #tpu.memory_space<vmem>>, vector<1x8x128xf32>
    %52 = vector.shape_cast %51 : vector<1x8x128xf32> to vector<8x128xf32>
    %53 = vector.shape_cast %49 : vector<8x128xf32> to vector<1x8x128xf32>
    tpu.vector_store %arg7[%50, %c0_23, %c0_24], %53 {strides = array<i32>} : memref<8x8x128xf32, #tpu.memory_space<vmem>>, vector<1x8x128xf32>,
    %c1_i32 = arith.constant 1 : i32
    %54 = arith.index_cast %c1_i32 : i32 to index
    %c0_25 = arith.constant 0 : index
    %c0_26 = arith.constant 0 : index
    %55 = vector.load %arg8[%54, %c0_25, %c0_26] : memref<8x8x384xf32, #tpu.memory_space<vmem>>, vector<1x8x384xf32>
    %56 = vector.shape_cast %55 : vector<1x8x384xf32> to vector<8x384xf32>
    %57 = arith.truncf %49 : vector<8x128xf32> to vector<8x128xbf16>
    %cst_27 = arith.constant dense<0.000000e+00> : vector<8x384xf32>
    %58 = tpu.matmul %57, %16, %cst_27 {dimension_numbers = #tpu.dot_dimension_numbers<[1], [0], [0], [1], [0, 0, 1, 1], [], []>} : vector<8x128xbf16>, vector<128x384xbf16>, vector<8x384xf32> -> vector<8x384xf32>
    %59 = vector.extract_strided_slice %56 {offsets = [0, 0], sizes = [8, 128], strides = [1, 1]} : vector<8x384xf32> to vector<8x128xf32>
    %60 = vector.extract_strided_slice %58 {offsets = [0, 0], sizes = [8, 128], strides = [1, 1]} : vector<8x384xf32> to vector<8x128xf32>
    %61 = arith.addf %59, %60 : vector<8x128xf32>
    %62 = arith.negf %61 : vector<8x128xf32>
    %63 = math.exp %62 : vector<8x128xf32>
    %cst_28 = arith.constant 1.000000e+00 : f32
    %64 = vector.broadcast %cst_28 : f32 to vector<8x128xf32>
    %65 = arith.addf %64, %63 : vector<8x128xf32>
    %66 = arith.divf %64, %65 : vector<8x128xf32>
    %67 = vector.extract_strided_slice %56 {offsets = [0, 128], sizes = [8, 128], strides = [1, 1]} : vector<8x384xf32> to vector<8x128xf32>
    %68 = vector.extract_strided_slice %58 {offsets = [0, 128], sizes = [8, 128], strides = [1, 1]} : vector<8x384xf32> to vector<8x128xf32>
    %69 = arith.addf %67, %68 : vector<8x128xf32>
    %70 = arith.negf %69 : vector<8x128xf32>
    %71 = math.exp %70 : vector<8x128xf32>
    %cst_29 = arith.constant 1.000000e+00 : f32
    %72 = vector.broadcast %cst_29 : f32 to vector<8x128xf32>
    %73 = arith.addf %72, %71 : vector<8x128xf32>
    %74 = arith.divf %72, %73 : vector<8x128xf32>
    %75 = vector.extract_strided_slice %56 {offsets = [0, 256], sizes = [8, 128], strides = [1, 1]} : vector<8x384xf32> to vector<8x128xf32>
    %76 = vector.extract_strided_slice %58 {offsets = [0, 256], sizes = [8, 128], strides = [1, 1]} : vector<8x384xf32> to vector<8x128xf32>
    %77 = arith.addf %76, %15 : vector<8x128xf32>
    %78 = arith.mulf %66, %77 : vector<8x128xf32>
    %79 = arith.addf %75, %78 : vector<8x128xf32>
    %80 = math.tanh %79 : vector<8x128xf32>
    %cst_30 = arith.constant 1.000000e+00 : f32
    %81 = vector.broadcast %cst_30 : f32 to vector<8x128xf32>
    %82 = arith.subf %81, %74 : vector<8x128xf32>
    %83 = arith.mulf %82, %80 : vector<8x128xf32>
    %84 = arith.mulf %74, %49 : vector<8x128xf32>
    %85 = arith.addf %83, %84 : vector<8x128xf32>
    %86 = arith.index_cast %c1_i32 : i32 to index
    %c0_31 = arith.constant 0 : index
    %c0_32 = arith.constant 0 : index
    %87 = vector.load %arg7[%86, %c0_31, %c0_32] : memref<8x8x128xf32, #tpu.memory_space<vmem>>, vector<1x8x128xf32>
    %88 = vector.shape_cast %87 : vector<1x8x128xf32> to vector<8x128xf32>
    %89 = vector.shape_cast %85 : vector<8x128xf32> to vector<1x8x128xf32>
    tpu.vector_store %arg7[%86, %c0_31, %c0_32], %89 {strides = array<i32>} : memref<8x8x128xf32, #tpu.memory_space<vmem>>, vector<1x8x128xf32>,
    %c2_i32 = arith.constant 2 : i32
    %90 = arith.index_cast %c2_i32 : i32 to index
    %c0_33 = arith.constant 0 : index
    %c0_34 = arith.constant 0 : index
    %91 = vector.load %arg8[%90, %c0_33, %c0_34] : memref<8x8x384xf32, #tpu.memory_space<vmem>>, vector<1x8x384xf32>
    %92 = vector.shape_cast %91 : vector<1x8x384xf32> to vector<8x384xf32>
    %93 = arith.truncf %85 : vector<8x128xf32> to vector<8x128xbf16>
    %cst_35 = arith.constant dense<0.000000e+00> : vector<8x384xf32>
    %94 = tpu.matmul %93, %16, %cst_35 {dimension_numbers = #tpu.dot_dimension_numbers<[1], [0], [0], [1], [0, 0, 1, 1], [], []>} : vector<8x128xbf16>, vector<128x384xbf16>, vector<8x384xf32> -> vector<8x384xf32>
    %95 = vector.extract_strided_slice %92 {offsets = [0, 0], sizes = [8, 128], strides = [1, 1]} : vector<8x384xf32> to vector<8x128xf32>
    %96 = vector.extract_strided_slice %94 {offsets = [0, 0], sizes = [8, 128], strides = [1, 1]} : vector<8x384xf32> to vector<8x128xf32>
    %97 = arith.addf %95, %96 : vector<8x128xf32>
    %98 = arith.negf %97 : vector<8x128xf32>
    %99 = math.exp %98 : vector<8x128xf32>
    %cst_36 = arith.constant 1.000000e+00 : f32
    %100 = vector.broadcast %cst_36 : f32 to vector<8x128xf32>
    %101 = arith.addf %100, %99 : vector<8x128xf32>
    %102 = arith.divf %100, %101 : vector<8x128xf32>
    %103 = vector.extract_strided_slice %92 {offsets = [0, 128], sizes = [8, 128], strides = [1, 1]} : vector<8x384xf32> to vector<8x128xf32>
    %104 = vector.extract_strided_slice %94 {offsets = [0, 128], sizes = [8, 128], strides = [1, 1]} : vector<8x384xf32> to vector<8x128xf32>
    %105 = arith.addf %103, %104 : vector<8x128xf32>
    %106 = arith.negf %105 : vector<8x128xf32>
    %107 = math.exp %106 : vector<8x128xf32>
    %cst_37 = arith.constant 1.000000e+00 : f32
    %108 = vector.broadcast %cst_37 : f32 to vector<8x128xf32>
    %109 = arith.addf %108, %107 : vector<8x128xf32>
    %110 = arith.divf %108, %109 : vector<8x128xf32>
    %111 = vector.extract_strided_slice %92 {offsets = [0, 256], sizes = [8, 128], strides = [1, 1]} : vector<8x384xf32> to vector<8x128xf32>
    %112 = vector.extract_strided_slice %94 {offsets = [0, 256], sizes = [8, 128], strides = [1, 1]} : vector<8x384xf32> to vector<8x128xf32>
    %113 = arith.addf %112, %15 : vector<8x128xf32>
    %114 = arith.mulf %102, %113 : vector<8x128xf32>
    %115 = arith.addf %111, %114 : vector<8x128xf32>
    %116 = math.tanh %115 : vector<8x128xf32>
    %cst_38 = arith.constant 1.000000e+00 : f32
    %117 = vector.broadcast %cst_38 : f32 to vector<8x128xf32>
    %118 = arith.subf %117, %110 : vector<8x128xf32>
    %119 = arith.mulf %118, %116 : vector<8x128xf32>
    %120 = arith.mulf %110, %85 : vector<8x128xf32>
    %121 = arith.addf %119, %120 : vector<8x128xf32>
    %122 = arith.index_cast %c2_i32 : i32 to index
    %c0_39 = arith.constant 0 : index
    %c0_40 = arith.constant 0 : index
    %123 = vector.load %arg7[%122, %c0_39, %c0_40] : memref<8x8x128xf32, #tpu.memory_space<vmem>>, vector<1x8x128xf32>
    %124 = vector.shape_cast %123 : vector<1x8x128xf32> to vector<8x128xf32>
    %125 = vector.shape_cast %121 : vector<8x128xf32> to vector<1x8x128xf32>
    tpu.vector_store %arg7[%122, %c0_39, %c0_40], %125 {strides = array<i32>} : memref<8x8x128xf32, #tpu.memory_space<vmem>>, vector<1x8x128xf32>,
    %c3_i32 = arith.constant 3 : i32
    %126 = arith.index_cast %c3_i32 : i32 to index
    %c0_41 = arith.constant 0 : index
    %c0_42 = arith.constant 0 : index
    %127 = vector.load %arg8[%126, %c0_41, %c0_42] : memref<8x8x384xf32, #tpu.memory_space<vmem>>, vector<1x8x384xf32>
    %128 = vector.shape_cast %127 : vector<1x8x384xf32> to vector<8x384xf32>
    %129 = arith.truncf %121 : vector<8x128xf32> to vector<8x128xbf16>
    %cst_43 = arith.constant dense<0.000000e+00> : vector<8x384xf32>
    %130 = tpu.matmul %129, %16, %cst_43 {dimension_numbers = #tpu.dot_dimension_numbers<[1], [0], [0], [1], [0, 0, 1, 1], [], []>} : vector<8x128xbf16>, vector<128x384xbf16>, vector<8x384xf32> -> vector<8x384xf32>
    %131 = vector.extract_strided_slice %128 {offsets = [0, 0], sizes = [8, 128], strides = [1, 1]} : vector<8x384xf32> to vector<8x128xf32>
    %132 = vector.extract_strided_slice %130 {offsets = [0, 0], sizes = [8, 128], strides = [1, 1]} : vector<8x384xf32> to vector<8x128xf32>
    %133 = arith.addf %131, %132 : vector<8x128xf32>
    %134 = arith.negf %133 : vector<8x128xf32>
    %135 = math.exp %134 : vector<8x128xf32>
    %cst_44 = arith.constant 1.000000e+00 : f32
    %136 = vector.broadcast %cst_44 : f32 to vector<8x128xf32>
    %137 = arith.addf %136, %135 : vector<8x128xf32>
    %138 = arith.divf %136, %137 : vector<8x128xf32>
    %139 = vector.extract_strided_slice %128 {offsets = [0, 128], sizes = [8, 128], strides = [1, 1]} : vector<8x384xf32> to vector<8x128xf32>
    %140 = vector.extract_strided_slice %130 {offsets = [0, 128], sizes = [8, 128], strides = [1, 1]} : vector<8x384xf32> to vector<8x128xf32>
    %141 = arith.addf %139, %140 : vector<8x128xf32>
    %142 = arith.negf %141 : vector<8x128xf32>
    %143 = math.exp %142 : vector<8x128xf32>
    %cst_45 = arith.constant 1.000000e+00 : f32
    %144 = vector.broadcast %cst_45 : f32 to vector<8x128xf32>
    %145 = arith.addf %144, %143 : vector<8x128xf32>
    %146 = arith.divf %144, %145 : vector<8x128xf32>
    %147 = vector.extract_strided_slice %128 {offsets = [0, 256], sizes = [8, 128], strides = [1, 1]} : vector<8x384xf32> to vector<8x128xf32>
    %148 = vector.extract_strided_slice %130 {offsets = [0, 256], sizes = [8, 128], strides = [1, 1]} : vector<8x384xf32> to vector<8x128xf32>
    %149 = arith.addf %148, %15 : vector<8x128xf32>
    %150 = arith.mulf %138, %149 : vector<8x128xf32>
    %151 = arith.addf %147, %150 : vector<8x128xf32>
    %152 = math.tanh %151 : vector<8x128xf32>
    %cst_46 = arith.constant 1.000000e+00 : f32
    %153 = vector.broadcast %cst_46 : f32 to vector<8x128xf32>
    %154 = arith.subf %153, %146 : vector<8x128xf32>
    %155 = arith.mulf %154, %152 : vector<8x128xf32>
    %156 = arith.mulf %146, %121 : vector<8x128xf32>
    %157 = arith.addf %155, %156 : vector<8x128xf32>
    %158 = arith.index_cast %c3_i32 : i32 to index
    %c0_47 = arith.constant 0 : index
    %c0_48 = arith.constant 0 : index
    %159 = vector.load %arg7[%158, %c0_47, %c0_48] : memref<8x8x128xf32, #tpu.memory_space<vmem>>, vector<1x8x128xf32>
    %160 = vector.shape_cast %159 : vector<1x8x128xf32> to vector<8x128xf32>
    %161 = vector.shape_cast %157 : vector<8x128xf32> to vector<1x8x128xf32>
    tpu.vector_store %arg7[%158, %c0_47, %c0_48], %161 {strides = array<i32>} : memref<8x8x128xf32, #tpu.memory_space<vmem>>, vector<1x8x128xf32>,
    %c4_i32 = arith.constant 4 : i32
    %162 = arith.index_cast %c4_i32 : i32 to index
    %c0_49 = arith.constant 0 : index
    %c0_50 = arith.constant 0 : index
    %163 = vector.load %arg8[%162, %c0_49, %c0_50] : memref<8x8x384xf32, #tpu.memory_space<vmem>>, vector<1x8x384xf32>
    %164 = vector.shape_cast %163 : vector<1x8x384xf32> to vector<8x384xf32>
    %165 = arith.truncf %157 : vector<8x128xf32> to vector<8x128xbf16>
    %cst_51 = arith.constant dense<0.000000e+00> : vector<8x384xf32>
    %166 = tpu.matmul %165, %16, %cst_51 {dimension_numbers = #tpu.dot_dimension_numbers<[1], [0], [0], [1], [0, 0, 1, 1], [], []>} : vector<8x128xbf16>, vector<128x384xbf16>, vector<8x384xf32> -> vector<8x384xf32>
    %167 = vector.extract_strided_slice %164 {offsets = [0, 0], sizes = [8, 128], strides = [1, 1]} : vector<8x384xf32> to vector<8x128xf32>
    %168 = vector.extract_strided_slice %166 {offsets = [0, 0], sizes = [8, 128], strides = [1, 1]} : vector<8x384xf32> to vector<8x128xf32>
    %169 = arith.addf %167, %168 : vector<8x128xf32>
    %170 = arith.negf %169 : vector<8x128xf32>
    %171 = math.exp %170 : vector<8x128xf32>
    %cst_52 = arith.constant 1.000000e+00 : f32
    %172 = vector.broadcast %cst_52 : f32 to vector<8x128xf32>
    %173 = arith.addf %172, %171 : vector<8x128xf32>
    %174 = arith.divf %172, %173 : vector<8x128xf32>
    %175 = vector.extract_strided_slice %164 {offsets = [0, 128], sizes = [8, 128], strides = [1, 1]} : vector<8x384xf32> to vector<8x128xf32>
    %176 = vector.extract_strided_slice %166 {offsets = [0, 128], sizes = [8, 128], strides = [1, 1]} : vector<8x384xf32> to vector<8x128xf32>
    %177 = arith.addf %175, %176 : vector<8x128xf32>
    %178 = arith.negf %177 : vector<8x128xf32>
    %179 = math.exp %178 : vector<8x128xf32>
    %cst_53 = arith.constant 1.000000e+00 : f32
    %180 = vector.broadcast %cst_53 : f32 to vector<8x128xf32>
    %181 = arith.addf %180, %179 : vector<8x128xf32>
    %182 = arith.divf %180, %181 : vector<8x128xf32>
    %183 = vector.extract_strided_slice %164 {offsets = [0, 256], sizes = [8, 128], strides = [1, 1]} : vector<8x384xf32> to vector<8x128xf32>
    %184 = vector.extract_strided_slice %166 {offsets = [0, 256], sizes = [8, 128], strides = [1, 1]} : vector<8x384xf32> to vector<8x128xf32>
    %185 = arith.addf %184, %15 : vector<8x128xf32>
    %186 = arith.mulf %174, %185 : vector<8x128xf32>
    %187 = arith.addf %183, %186 : vector<8x128xf32>
    %188 = math.tanh %187 : vector<8x128xf32>
    %cst_54 = arith.constant 1.000000e+00 : f32
    %189 = vector.broadcast %cst_54 : f32 to vector<8x128xf32>
    %190 = arith.subf %189, %182 : vector<8x128xf32>
    %191 = arith.mulf %190, %188 : vector<8x128xf32>
    %192 = arith.mulf %182, %157 : vector<8x128xf32>
    %193 = arith.addf %191, %192 : vector<8x128xf32>
    %194 = arith.index_cast %c4_i32 : i32 to index
    %c0_55 = arith.constant 0 : index
    %c0_56 = arith.constant 0 : index
    %195 = vector.load %arg7[%194, %c0_55, %c0_56] : memref<8x8x128xf32, #tpu.memory_space<vmem>>, vector<1x8x128xf32>
    %196 = vector.shape_cast %195 : vector<1x8x128xf32> to vector<8x128xf32>
    %197 = vector.shape_cast %193 : vector<8x128xf32> to vector<1x8x128xf32>
    tpu.vector_store %arg7[%194, %c0_55, %c0_56], %197 {strides = array<i32>} : memref<8x8x128xf32, #tpu.memory_space<vmem>>, vector<1x8x128xf32>,
    %c5_i32 = arith.constant 5 : i32
    %198 = arith.index_cast %c5_i32 : i32 to index
    %c0_57 = arith.constant 0 : index
    %c0_58 = arith.constant 0 : index
    %199 = vector.load %arg8[%198, %c0_57, %c0_58] : memref<8x8x384xf32, #tpu.memory_space<vmem>>, vector<1x8x384xf32>
    %200 = vector.shape_cast %199 : vector<1x8x384xf32> to vector<8x384xf32>
    %201 = arith.truncf %193 : vector<8x128xf32> to vector<8x128xbf16>
    %cst_59 = arith.constant dense<0.000000e+00> : vector<8x384xf32>
    %202 = tpu.matmul %201, %16, %cst_59 {dimension_numbers = #tpu.dot_dimension_numbers<[1], [0], [0], [1], [0, 0, 1, 1], [], []>} : vector<8x128xbf16>, vector<128x384xbf16>, vector<8x384xf32> -> vector<8x384xf32>
    %203 = vector.extract_strided_slice %200 {offsets = [0, 0], sizes = [8, 128], strides = [1, 1]} : vector<8x384xf32> to vector<8x128xf32>
    %204 = vector.extract_strided_slice %202 {offsets = [0, 0], sizes = [8, 128], strides = [1, 1]} : vector<8x384xf32> to vector<8x128xf32>
    %205 = arith.addf %203, %204 : vector<8x128xf32>
    %206 = arith.negf %205 : vector<8x128xf32>
    %207 = math.exp %206 : vector<8x128xf32>
    %cst_60 = arith.constant 1.000000e+00 : f32
    %208 = vector.broadcast %cst_60 : f32 to vector<8x128xf32>
    %209 = arith.addf %208, %207 : vector<8x128xf32>
    %210 = arith.divf %208, %209 : vector<8x128xf32>
    %211 = vector.extract_strided_slice %200 {offsets = [0, 128], sizes = [8, 128], strides = [1, 1]} : vector<8x384xf32> to vector<8x128xf32>
    %212 = vector.extract_strided_slice %202 {offsets = [0, 128], sizes = [8, 128], strides = [1, 1]} : vector<8x384xf32> to vector<8x128xf32>
    %213 = arith.addf %211, %212 : vector<8x128xf32>
    %214 = arith.negf %213 : vector<8x128xf32>
    %215 = math.exp %214 : vector<8x128xf32>
    %cst_61 = arith.constant 1.000000e+00 : f32
    %216 = vector.broadcast %cst_61 : f32 to vector<8x128xf32>
    %217 = arith.addf %216, %215 : vector<8x128xf32>
    %218 = arith.divf %216, %217 : vector<8x128xf32>
    %219 = vector.extract_strided_slice %200 {offsets = [0, 256], sizes = [8, 128], strides = [1, 1]} : vector<8x384xf32> to vector<8x128xf32>
    %220 = vector.extract_strided_slice %202 {offsets = [0, 256], sizes = [8, 128], strides = [1, 1]} : vector<8x384xf32> to vector<8x128xf32>
    %221 = arith.addf %220, %15 : vector<8x128xf32>
    %222 = arith.mulf %210, %221 : vector<8x128xf32>
    %223 = arith.addf %219, %222 : vector<8x128xf32>
    %224 = math.tanh %223 : vector<8x128xf32>
    %cst_62 = arith.constant 1.000000e+00 : f32
    %225 = vector.broadcast %cst_62 : f32 to vector<8x128xf32>
    %226 = arith.subf %225, %218 : vector<8x128xf32>
    %227 = arith.mulf %226, %224 : vector<8x128xf32>
    %228 = arith.mulf %218, %193 : vector<8x128xf32>
    %229 = arith.addf %227, %228 : vector<8x128xf32>
    %230 = arith.index_cast %c5_i32 : i32 to index
    %c0_63 = arith.constant 0 : index
    %c0_64 = arith.constant 0 : index
    %231 = vector.load %arg7[%230, %c0_63, %c0_64] : memref<8x8x128xf32, #tpu.memory_space<vmem>>, vector<1x8x128xf32>
    %232 = vector.shape_cast %231 : vector<1x8x128xf32> to vector<8x128xf32>
    %233 = vector.shape_cast %229 : vector<8x128xf32> to vector<1x8x128xf32>
    tpu.vector_store %arg7[%230, %c0_63, %c0_64], %233 {strides = array<i32>} : memref<8x8x128xf32, #tpu.memory_space<vmem>>, vector<1x8x128xf32>,
    %c6_i32 = arith.constant 6 : i32
    %234 = arith.index_cast %c6_i32 : i32 to index
    %c0_65 = arith.constant 0 : index
    %c0_66 = arith.constant 0 : index
    %235 = vector.load %arg8[%234, %c0_65, %c0_66] : memref<8x8x384xf32, #tpu.memory_space<vmem>>, vector<1x8x384xf32>
    %236 = vector.shape_cast %235 : vector<1x8x384xf32> to vector<8x384xf32>
    %237 = arith.truncf %229 : vector<8x128xf32> to vector<8x128xbf16>
    %cst_67 = arith.constant dense<0.000000e+00> : vector<8x384xf32>
    %238 = tpu.matmul %237, %16, %cst_67 {dimension_numbers = #tpu.dot_dimension_numbers<[1], [0], [0], [1], [0, 0, 1, 1], [], []>} : vector<8x128xbf16>, vector<128x384xbf16>, vector<8x384xf32> -> vector<8x384xf32>
    %239 = vector.extract_strided_slice %236 {offsets = [0, 0], sizes = [8, 128], strides = [1, 1]} : vector<8x384xf32> to vector<8x128xf32>
    %240 = vector.extract_strided_slice %238 {offsets = [0, 0], sizes = [8, 128], strides = [1, 1]} : vector<8x384xf32> to vector<8x128xf32>
    %241 = arith.addf %239, %240 : vector<8x128xf32>
    %242 = arith.negf %241 : vector<8x128xf32>
    %243 = math.exp %242 : vector<8x128xf32>
    %cst_68 = arith.constant 1.000000e+00 : f32
    %244 = vector.broadcast %cst_68 : f32 to vector<8x128xf32>
    %245 = arith.addf %244, %243 : vector<8x128xf32>
    %246 = arith.divf %244, %245 : vector<8x128xf32>
    %247 = vector.extract_strided_slice %236 {offsets = [0, 128], sizes = [8, 128], strides = [1, 1]} : vector<8x384xf32> to vector<8x128xf32>
    %248 = vector.extract_strided_slice %238 {offsets = [0, 128], sizes = [8, 128], strides = [1, 1]} : vector<8x384xf32> to vector<8x128xf32>
    %249 = arith.addf %247, %248 : vector<8x128xf32>
    %250 = arith.negf %249 : vector<8x128xf32>
    %251 = math.exp %250 : vector<8x128xf32>
    %cst_69 = arith.constant 1.000000e+00 : f32
    %252 = vector.broadcast %cst_69 : f32 to vector<8x128xf32>
    %253 = arith.addf %252, %251 : vector<8x128xf32>
    %254 = arith.divf %252, %253 : vector<8x128xf32>
    %255 = vector.extract_strided_slice %236 {offsets = [0, 256], sizes = [8, 128], strides = [1, 1]} : vector<8x384xf32> to vector<8x128xf32>
    %256 = vector.extract_strided_slice %238 {offsets = [0, 256], sizes = [8, 128], strides = [1, 1]} : vector<8x384xf32> to vector<8x128xf32>
    %257 = arith.addf %256, %15 : vector<8x128xf32>
    %258 = arith.mulf %246, %257 : vector<8x128xf32>
    %259 = arith.addf %255, %258 : vector<8x128xf32>
    %260 = math.tanh %259 : vector<8x128xf32>
    %cst_70 = arith.constant 1.000000e+00 : f32
    %261 = vector.broadcast %cst_70 : f32 to vector<8x128xf32>
    %262 = arith.subf %261, %254 : vector<8x128xf32>
    %263 = arith.mulf %262, %260 : vector<8x128xf32>
    %264 = arith.mulf %254, %229 : vector<8x128xf32>
    %265 = arith.addf %263, %264 : vector<8x128xf32>
    %266 = arith.index_cast %c6_i32 : i32 to index
    %c0_71 = arith.constant 0 : index
    %c0_72 = arith.constant 0 : index
    %267 = vector.load %arg7[%266, %c0_71, %c0_72] : memref<8x8x128xf32, #tpu.memory_space<vmem>>, vector<1x8x128xf32>
    %268 = vector.shape_cast %267 : vector<1x8x128xf32> to vector<8x128xf32>
    %269 = vector.shape_cast %265 : vector<8x128xf32> to vector<1x8x128xf32>
    tpu.vector_store %arg7[%266, %c0_71, %c0_72], %269 {strides = array<i32>} : memref<8x8x128xf32, #tpu.memory_space<vmem>>, vector<1x8x128xf32>,
    %c7_i32 = arith.constant 7 : i32
    %270 = arith.index_cast %c7_i32 : i32 to index
    %c0_73 = arith.constant 0 : index
    %c0_74 = arith.constant 0 : index
    %271 = vector.load %arg8[%270, %c0_73, %c0_74] : memref<8x8x384xf32, #tpu.memory_space<vmem>>, vector<1x8x384xf32>
    %272 = vector.shape_cast %271 : vector<1x8x384xf32> to vector<8x384xf32>
    %273 = arith.truncf %265 : vector<8x128xf32> to vector<8x128xbf16>
    %cst_75 = arith.constant dense<0.000000e+00> : vector<8x384xf32>
    %274 = tpu.matmul %273, %16, %cst_75 {dimension_numbers = #tpu.dot_dimension_numbers<[1], [0], [0], [1], [0, 0, 1, 1], [], []>} : vector<8x128xbf16>, vector<128x384xbf16>, vector<8x384xf32> -> vector<8x384xf32>
    %275 = vector.extract_strided_slice %272 {offsets = [0, 0], sizes = [8, 128], strides = [1, 1]} : vector<8x384xf32> to vector<8x128xf32>
    %276 = vector.extract_strided_slice %274 {offsets = [0, 0], sizes = [8, 128], strides = [1, 1]} : vector<8x384xf32> to vector<8x128xf32>
    %277 = arith.addf %275, %276 : vector<8x128xf32>
    %278 = arith.negf %277 : vector<8x128xf32>
    %279 = math.exp %278 : vector<8x128xf32>
    %cst_76 = arith.constant 1.000000e+00 : f32
    %280 = vector.broadcast %cst_76 : f32 to vector<8x128xf32>
    %281 = arith.addf %280, %279 : vector<8x128xf32>
    %282 = arith.divf %280, %281 : vector<8x128xf32>
    %283 = vector.extract_strided_slice %272 {offsets = [0, 128], sizes = [8, 128], strides = [1, 1]} : vector<8x384xf32> to vector<8x128xf32>
    %284 = vector.extract_strided_slice %274 {offsets = [0, 128], sizes = [8, 128], strides = [1, 1]} : vector<8x384xf32> to vector<8x128xf32>
    %285 = arith.addf %283, %284 : vector<8x128xf32>
    %286 = arith.negf %285 : vector<8x128xf32>
    %287 = math.exp %286 : vector<8x128xf32>
    %cst_77 = arith.constant 1.000000e+00 : f32
    %288 = vector.broadcast %cst_77 : f32 to vector<8x128xf32>
    %289 = arith.addf %288, %287 : vector<8x128xf32>
    %290 = arith.divf %288, %289 : vector<8x128xf32>
    %291 = vector.extract_strided_slice %272 {offsets = [0, 256], sizes = [8, 128], strides = [1, 1]} : vector<8x384xf32> to vector<8x128xf32>
    %292 = vector.extract_strided_slice %274 {offsets = [0, 256], sizes = [8, 128], strides = [1, 1]} : vector<8x384xf32> to vector<8x128xf32>
    %293 = arith.addf %292, %15 : vector<8x128xf32>
    %294 = arith.mulf %282, %293 : vector<8x128xf32>
    %295 = arith.addf %291, %294 : vector<8x128xf32>
    %296 = math.tanh %295 : vector<8x128xf32>
    %cst_78 = arith.constant 1.000000e+00 : f32
    %297 = vector.broadcast %cst_78 : f32 to vector<8x128xf32>
    %298 = arith.subf %297, %290 : vector<8x128xf32>
    %299 = arith.mulf %298, %296 : vector<8x128xf32>
    %300 = arith.mulf %290, %265 : vector<8x128xf32>
    %301 = arith.addf %299, %300 : vector<8x128xf32>
    %302 = arith.index_cast %c7_i32 : i32 to index
    %c0_79 = arith.constant 0 : index
    %c0_80 = arith.constant 0 : index
    %303 = vector.load %arg7[%302, %c0_79, %c0_80] : memref<8x8x128xf32, #tpu.memory_space<vmem>>, vector<1x8x128xf32>
    %304 = vector.shape_cast %303 : vector<1x8x128xf32> to vector<8x128xf32>
    %305 = vector.shape_cast %301 : vector<8x128xf32> to vector<1x8x128xf32>
    tpu.vector_store %arg7[%302, %c0_79, %c0_80], %305 {strides = array<i32>} : memref<8x8x128xf32, #tpu.memory_space<vmem>>, vector<1x8x128xf32>,
    %c8_i32 = arith.constant 8 : i32
    %c0_81 = arith.constant 0 : index
    %c0_82 = arith.constant 0 : index
    %306 = vector.load %arg9[%c0_81, %c0_82] : memref<8x128xf32, #tpu.memory_space<vmem>>, vector<8x128xf32>
    tpu.vector_store %arg9[%c0_81, %c0_82], %301 {strides = array<i32>} : memref<8x128xf32, #tpu.memory_space<vmem>>, vector<8x128xf32>,
    return
  }
  func.func @transform_0(%arg0: i32, %arg1: i32) -> (i32, i32, i32) {
    %c0_i32 = arith.constant 0 : i32
    %c0_i32_0 = arith.constant 0 : i32
    return %arg1, %arg0, %c0_i32 : i32, i32, i32
  }
  func.func @transform_1(%arg0: i32, %arg1: i32) -> (i32, i32) {
    %c0_i32 = arith.constant 0 : i32
    %c0_i32_0 = arith.constant 0 : i32
    %c0_i32_1 = arith.constant 0 : i32
    return %c0_i32, %c0_i32_0 : i32, i32
  }
  func.func @transform_2(%arg0: i32, %arg1: i32) -> (i32, i32) {
    %c0_i32 = arith.constant 0 : i32
    %c0_i32_0 = arith.constant 0 : i32
    %c0_i32_1 = arith.constant 0 : i32
    return %c0_i32, %c0_i32_0 : i32, i32
  }
  func.func @transform_3(%arg0: i32, %arg1: i32) -> (i32, i32) {
    %c0_i32 = arith.constant 0 : i32
    %c0_i32_0 = arith.constant 0 : i32
    %c0_i32_1 = arith.constant 0 : i32
    return %c0_i32, %c0_i32_0 : i32, i32
  }
  func.func @transform_4(%arg0: i32, %arg1: i32) -> (i32, i32) {
    %c0_i32 = arith.constant 0 : i32
    %c0_i32_0 = arith.constant 0 : i32
    %c0_i32_1 = arith.constant 0 : i32
    return %c0_i32, %c0_i32_0 : i32, i32
  }
  func.func @transform_5(%arg0: i32, %arg1: i32) -> (i32, i32, i32) {
    %c0_i32 = arith.constant 0 : i32
    %c0_i32_0 = arith.constant 0 : i32
    return %arg1, %arg0, %c0_i32 : i32, i32, i32
  }
}

</mosaic_0001>

<bundles_post_ra>
// kernel: tpu_custom_call.1
= control target key start
LH: loop header
LB: loop body
LE: loop exit
PB: predicated region body
PF: predicated region fallthrough
CT: control target
= control target key end

     0   :  { %10 = vsyncpa [#allocation5], 0  ;;  %s2626_s0 = inlined_call_operand.hbm [shape: f32[8,8,128], index: 0, kind: input, shape index: {}]   ;;  %s2627_s1 = inlined_call_operand.hbm [shape: bf16[128,384], index: 1, kind: input, shape index: {}]   ;;  %s2628_s2 = inlined_call_operand.hbm [shape: bf16[128,384], index: 2, kind: input, shape index: {}]   ;;  %s2629_s3 = inlined_call_operand.vmem [shape: f32[1,384], index: 3, kind: input, shape index: {}]   ;;  %s2630_s4 = inlined_call_operand.vmem [shape: f32[1,128], index: 4, kind: input, shape index: {}]   ;;  %s2631_s5 = inlined_call_operand.hbm [shape: f32[8,8,128], index: 5, kind: output, shape index: {}]  }
   0x1   :  { %11 = vsyncpa [#allocation8], 0 }
   0x2   :  { %12 = vsyncpa [#allocation6], 0  ;;  %s2088_s18 = smov [#allocation7]   ;;  %s1994_s22 = scalar_lea.hbm %s2627_s1, 3072 }
   0x3   :  { %s30_s19 = sshll.u32 %s2088_s18, 4  ;;  %p1995_p0 = scmp.ne.s32.totalorder %s2627_s1, %s1994_s22  ;;  %s31_s19 = int_to_ptr.vmem [resolvable:$true] %s30_s19 }
   0x4   :  { %p1998_p1 = scmp.lt.u32.totalorder %s1994_s22, %s2627_s1 }
   0x6   :  { %p2000_p2 = pnand %p1998_p1, %p1995_p0 }
   0x8   :  { %2003 = shalt.err (!%p2000_p2)
}
   0x9   :  { %s2004_s27 = scalar_lea.vmem %s31_s19, 3072  ;;  %p2009_p4 = scmp.lt.s32.totalorder %s31_s19, %s31_s19 }
   0xa   :  { %p2005_p3 = scmp.ne.s32.totalorder %s31_s19, %s2004_s27  ;;  %p2010_p5 = scmp.lt.s32.totalorder %s2004_s27, %s2004_s27 }
   0xc   :  { %p2011_p6 = por %p2010_p5, %p2009_p4 }
   0xe   :  { %p2012_p7 = pnand %p2011_p6, %p2005_p3 }
  0x10   :  { %2015 = shalt.err (!%p2012_p7)
}
  0x11   :  { %s2089_s28 = smov 192   ;;  %s2090_s29 = smov 12  }
  0x12   :  { %36 = dma.hbm_to_vmem [thread:$0]  %s2627_s1, 3072, %s31_s19, [#allocation8], %s2089_s28, %s2089_s28, %s2090_s29  }
  0x13   :  { %s2091_s7 = smov [#allocation4]   ;;  %s2016_s11 = scalar_lea.hbm %s2626_s0, 1024 }
  0x14   :  { %s18_s8 = sshll.u32 %s2091_s7, 4  ;;  %p2017_p8 = scmp.ne.s32.totalorder %s2626_s0, %s2016_s11  ;;  %s19_s8 = int_to_ptr.vmem [resolvable:$true] %s18_s8 }
  0x15   :  { %p2020_p9 = scmp.lt.u32.totalorder %s2016_s11, %s2626_s0 }
  0x17   :  { %p2022_p10 = pnand %p2020_p9, %p2017_p8 }
  0x19   :  { %2025 = shalt.err (!%p2022_p10)
}
  0x1a   :  { %s2026_s16 = scalar_lea.vmem %s19_s8, 1024  ;;  %p2031_p12 = scmp.lt.s32.totalorder %s19_s8, %s19_s8 }
  0x1b   :  { %p2027_p11 = scmp.ne.s32.totalorder %s19_s8, %s2026_s16  ;;  %p2032_p13 = scmp.lt.s32.totalorder %s2026_s16, %s2026_s16 }
  0x1d   :  { %p2033_p0 = por %p2032_p13, %p2031_p12 }
  0x1f   :  { %p2034_p1 = pnand %p2033_p0, %p2027_p11 }
  0x21   :  { %2037 = shalt.err (!%p2034_p1)
}
  0x22   :  { %s2092_s1 = smov 128   ;;  %s2093_s17 = smov 8  }
  0x23   :  { %24 = dma.hbm_to_vmem [thread:$0]  %s2626_s0, 1024, %s19_s8, [#allocation5], %s2092_s1, %s2092_s1, %s2093_s17  }
  0x24   :  { %s2094_s20 = smov [#allocation9]   ;;  %s2038_s24 = scalar_lea.hbm %s2628_s2, 3072 }
  0x25   :  { %s42_s21 = sshll.u32 %s2094_s20, 4  ;;  %p2039_p2 = scmp.ne.s32.totalorder %s2628_s2, %s2038_s24  ;;  %s43_s21 = int_to_ptr.vmem [resolvable:$true] %s42_s21 }
  0x26   :  { %p2042_p3 = scmp.lt.u32.totalorder %s2038_s24, %s2628_s2 }
  0x28   :  { %p2044_p4 = pnand %p2042_p3, %p2039_p2 }
  0x2a   :  { %2047 = shalt.err (!%p2044_p4)
}
  0x2b   :  { %s2048_s6 = scalar_lea.vmem %s43_s21, 3072  ;;  %p2053_p6 = scmp.lt.s32.totalorder %s43_s21, %s43_s21 }
  0x2c   :  { %p2049_p5 = scmp.ne.s32.totalorder %s43_s21, %s2048_s6  ;;  %p2054_p7 = scmp.lt.s32.totalorder %s2048_s6, %s2048_s6 }
  0x2e   :  { %p2055_p8 = por %p2054_p7, %p2053_p6 }
  0x30   :  { %p2056_p9 = pnand %p2055_p8, %p2049_p5 }
  0x32   :  { %2059 = shalt.err (!%p2056_p9)
}
  0x33   :  { %48 = dma.hbm_to_vmem [thread:$0]  %s2628_s2, 3072, %s43_s21, [#allocation8], %s2089_s28, %s2089_s28, %s2090_s29  }
  0x34   :  { %2082 = dma.done.wait [#allocation5], 1024  }
  0x35   :  { %2083 = vsyncadd [#allocation5], 4294966272 }
  0x36   :  { %2084 = dma.done.wait [#allocation8], 6144  }
  0x37   :  { %2085 = vsyncadd [#allocation8], 4294961152  ;;  %v2632_v0 = vmov 0   ;;  %v1829_v1 = vld [vmem:[#allocation7 + $0x4] ss:$12 sps:$4 sm:$0xff]   ;;  %v69_v13 = vld [vmem:[#allocation4 + $0x8] sm:$0xff]  ;;  %v114_v63 = vlaneseq }
  0x38   :  { %289 = vmatprep.mubr.bf16.mxu0 %v2632_v0  ;;  %v1831_v2 = vld [vmem:[#allocation7] ss:$12 sps:$4 sm:$0xff]   ;;  %257 = vmatprep.subr.bf16.mxu0 %v1829_v1  ;;  %v1832_v3 = vld [vmem:[#allocation7 + $0x1c] ss:$12 sps:$4 sm:$0xff]   ;;  %v1834_v4 = vld [vmem:[#allocation7 + $0x18] ss:$12 sps:$4 sm:$0xff]  }
  0x39   :  { %258 = vmatpush1.bf16.msra.mxu0 %v1831_v2  ;;  %v1835_v5 = vld [vmem:[#allocation7 + $0x34] ss:$12 sps:$4 sm:$0xff]   ;;  %v1837_v6 = vld [vmem:[#allocation7 + $0x30] ss:$12 sps:$4 sm:$0xff]   ;;  %v1838_v7 = vld [vmem:[#allocation7 + $0x4c] ss:$12 sps:$4 sm:$0xff]  }
  0x3a   :  { %259 = vmatprep.subr.bf16.mxu0 %v1832_v3  ;;  %v1849_v8 = vld [vmem:[#allocation7 + $0x8] ss:$12 sps:$4 sm:$0xff]   ;;  %v1841_v10 = vld [vmem:[#allocation7 + $0x64] ss:$12 sps:$4 sm:$0xff]   ;;  %v1853_v11 = vld [vmem:[#allocation7 + $0x20] ss:$12 sps:$4 sm:$0xff]  }
  0x3b   :  { %v1840_v9 = vld [vmem:[#allocation7 + $0x48] ss:$12 sps:$4 sm:$0xff]   ;;  %1633 = vmatprep.subr.bf16.mxu1 %v1849_v8  ;;  %v68_v12 = vld [vmem:[#allocation4] sm:$0xff]  ;;  %v1859_v18 = vld [vmem:[#allocation7 + $0x50] ss:$12 sps:$4 sm:$0xff]   ;;  %v2634_v40 = vmov 0.0  }
  0x3c   :  { %1634 = vmatpush3.bf16.msra.mxu1 %v1849_v8  ;;  %v1855_v14 = vld [vmem:[#allocation7 + $0x38] ss:$12 sps:$4 sm:$0xff]   ;;  %v1843_v15 = vld [vmem:[#allocation7 + $0x60] ss:$12 sps:$4 sm:$0xff]   ;;  %v76_v16 = vpack.c.bf16 %v69_v13, %v68_v12  ;;  %v1844_v17 = vld [vmem:[#allocation7 + $0x7c] ss:$12 sps:$4 sm:$0xff]  }
  0x3d   :  { %260 = vmatpush1.bf16.msra.mxu0 %v1834_v4  ;;  %1635 = vmatprep.subr.bf16.mxu1 %v1853_v11  ;;  %v1846_v19 = vld [vmem:[#allocation7 + $0x78] ss:$12 sps:$4 sm:$0xff]   ;;  %v1847_v20 = vld [vmem:[#allocation7 + $0x94] ss:$12 sps:$4 sm:$0xff]   ;;  %v1850_v22 = vld [vmem:[#allocation7 + $0x90] ss:$12 sps:$4 sm:$0xff]  }
  0x3e   :  { %261 = vmatprep.subr.bf16.mxu0 %v1835_v5  ;;  %1649 = vmatprep.mubr.bf16.mxu1 %v76_v16  ;;  %v1863_v21 = vld [vmem:[#allocation7 + $0x68] ss:$12 sps:$4 sm:$0xff]   ;;  %v1851_v23 = vld [vmem:[#allocation7 + $0xac] ss:$12 sps:$4 sm:$0xff]   ;;  %v2176_v26 = vld [vmem:[#allocation9 + $0x4] ss:$12 sps:$4 sm:$0xff]  }
  0x3f   :  { %v1867_v24 = vld [vmem:[#allocation7 + $0x80] ss:$12 sps:$4 sm:$0xff]   ;;  %v1854_v25 = vld [vmem:[#allocation7 + $0xa8] ss:$12 sps:$4 sm:$0xff]   ;;  %v1871_v27 = vld [vmem:[#allocation7 + $0x98] ss:$12 sps:$4 sm:$0xff]  }
  0x40   :  { %1636 = vmatpush3.bf16.msra.mxu1 %v1853_v11  ;;  %v2178_v28 = vld [vmem:[#allocation9] ss:$12 sps:$4 sm:$0xff]   ;;  %v2181_v29 = vld [vmem:[#allocation9 + $0x1c] ss:$12 sps:$4 sm:$0xff]   ;;  %v2183_v30 = vld [vmem:[#allocation9 + $0x18] ss:$12 sps:$4 sm:$0xff]  }
  0x41   :  { %262 = vmatpush1.bf16.msra.mxu0 %v1837_v6  ;;  %1637 = vmatprep.subr.bf16.mxu1 %v1855_v14  ;;  %v1875_v31 = vld [vmem:[#allocation7 + $0xb0] ss:$12 sps:$4 sm:$0xff]   ;;  %v2188_v34 = vld [vmem:[#allocation9 + $0x34] ss:$12 sps:$4 sm:$0xff]   ;;  %v2194_v37 = vld [vmem:[#allocation9 + $0x4c] ss:$12 sps:$4 sm:$0xff]  }
  0x42   :  { %263 = vmatprep.subr.bf16.mxu0 %v1838_v7  ;;  %v70_v32 = vld [vmem:[#allocation4 + $0x10] sm:$0xff]  ;;  %v71_v33 = vld [vmem:[#allocation4 + $0x18] sm:$0xff]  ;;  %v72_v38 = vld [vmem:[#allocation4 + $0x20] sm:$0xff]  ;;  %vm2097_vm0 = vmmov 0   ;;  %v2098_v61 = vmov 0.0|0.0   ;;  %v115_v1 = vshrl.u32 %v114_v63, 7 }
  0x43   :  { %v77_v35 = vpack.c.bf16 %v71_v33, %v70_v32  ;;  %v2191_v36 = vld [vmem:[#allocation9 + $0x30] ss:$12 sps:$4 sm:$0xff]   ;;  %v73_v39 = vld [vmem:[#allocation4 + $0x28] sm:$0xff]  ;;  %v2217_v50 = vld [vmem:[#allocation9 + $0x38] ss:$12 sps:$4 sm:$0xff]  }
  0x44   :  { %1638 = vmatpush3.bf16.msra.mxu1 %v1855_v14  ;;  %v2197_v41 = vld [vmem:[#allocation9 + $0x8] ss:$12 sps:$4 sm:$0xff]   ;;  %v78_v43 = vpack.c.bf16 %v73_v39, %v72_v38  ;;  %v2204_v44 = vld [vmem:[#allocation9 + $0x64] ss:$12 sps:$4 sm:$0xff]   ;;  %v2207_v45 = vld [vmem:[#allocation9 + $0x20] ss:$12 sps:$4 sm:$0xff]  }
  0x45   :  { %264 = vmatpush1.bf16.msra.mxu0 %v1840_v9  ;;  %1639 = vmatprep.subr.bf16.mxu1 %v1859_v18  ;;  %v2200_v42 = vld [vmem:[#allocation9 + $0x48] ss:$12 sps:$4 sm:$0xff]   ;;  %v2211_v46 = vld [vmem:[#allocation9 + $0x60] ss:$12 sps:$4 sm:$0xff]   ;;  %v75_v48 = vld [vmem:[#allocation4 + $0x38] sm:$0xff]  ;;  %v116_v2 = vsub.s32 0, %v115_v1 }
  0x46   :  { %265 = vmatprep.subr.bf16.mxu0 %v1841_v10  ;;  %v74_v47 = vld [vmem:[#allocation4 + $0x30] sm:$0xff]  ;;  %v2214_v49 = vld [vmem:[#allocation9 + $0x7c] ss:$12 sps:$4 sm:$0xff]   ;;  %v2221_v52 = vld [vmem:[#allocation9 + $0x78] ss:$12 sps:$4 sm:$0xff]   ;;  %v120_v4 = vsub.s32 1, %v115_v1 }
  0x47   :  { %v79_v51 = vpack.c.bf16 %v75_v48, %v74_v47  ;;  %v2225_v53 = vld [vmem:[#allocation9 + $0x94] ss:$12 sps:$4 sm:$0xff]   ;;  %v2228_v54 = vld [vmem:[#allocation9 + $0x50] ss:$12 sps:$4 sm:$0xff]   ;;  %v2237_v56 = vld [vmem:[#allocation9 + $0xac] ss:$12 sps:$4 sm:$0xff]  }
  0x48   :  { %1640 = vmatpush3.bf16.msra.mxu1 %v1859_v18  ;;  %v2234_v55 = vld [vmem:[#allocation9 + $0x90] ss:$12 sps:$4 sm:$0xff]   ;;  %v2240_v57 = vld [vmem:[#allocation9 + $0x68] ss:$12 sps:$4 sm:$0xff]   ;;  %v2249_v59 = vld [vmem:[#allocation9 + $0x80] ss:$12 sps:$4 sm:$0xff]  }
  0x49   :  { %266 = vmatpush1.bf16.msra.mxu0 %v1843_v15  ;;  %1641 = vmatprep.subr.bf16.mxu1 %v1863_v21  ;;  %v2244_v58 = vld [vmem:[#allocation9 + $0xa8] ss:$12 sps:$4 sm:$0xff]   ;;  %v2255_v60 = vld [vmem:[#allocation9 + $0x98] ss:$12 sps:$4 sm:$0xff]   ;;  %v2262_v62 = vld [vmem:[#allocation9 + $0xb0] ss:$12 sps:$4 sm:$0xff]  }
  0x4a   :  { %267 = vmatprep.subr.bf16.mxu0 %v1844_v17  ;;  %v112_v3 = vld [vmem:[%s2629_s3] sm:$0x7]  ;;  %v124_v12 = vsub.s32 2, %v115_v1 }
  0x4b   :  { %v117_v6 = vrot.slane %v112_v3, %v116_v2  ;;  %v121_v8 = vrot.slane %v112_v3, %v120_v4 }
  0x4c   :  { %1642 = vmatpush3.bf16.msra.mxu1 %v1863_v21  ;;  %v2306_v14 = vrot.slane %v112_v3, %v124_v12 }
  0x4d   :  { %268 = vmatpush1.bf16.msra.mxu0 %v1846_v19  ;;  %1643 = vmatprep.subr.bf16.mxu1 %v1867_v24 }
  0x4e   :  { %269 = vmatprep.subr.bf16.mxu0 %v1847_v20 }
  0x50   :  { %1644 = vmatpush3.bf16.msra.mxu1 %v1867_v24 }
  0x51   :  { %270 = vmatpush1.bf16.msra.mxu0 %v1850_v22  ;;  %1645 = vmatprep.subr.bf16.mxu1 %v1871_v27 }
  0x52   :  { %271 = vmatprep.subr.bf16.mxu0 %v1851_v23 }
  0x54   :  { %1646 = vmatpush3.bf16.msra.mxu1 %v1871_v27 }
  0x55   :  { %272 = vmatpush1.bf16.msra.mxu0 %v1854_v25  ;;  %1647 = vmatprep.subr.bf16.mxu1 %v1875_v31 }
  0x56   :  { %591 = vmatprep.subr.bf16.mxu0 %v2176_v26 }
  0x58   :  { %290 = vmatmul.mubr.bf16.vlgmr.msra.gmra.mrb[0].mxu0 %v76_v16  ;;  %1648 = vmatpush3.bf16.msra.mxu1 %v1875_v31 }
  0x59   :  { %592 = vmatpush1.bf16.msra.mxu0 %v2178_v28  ;;  %299 = vmatprep.mubr.bf16.mxu0 %v2632_v0 }
  0x5a   :  { %593 = vmatprep.subr.bf16.mxu0 %v2181_v29  ;;  %1657 = vmatprep.subr.bf16.mxu1 %v2634_v40 }
  0x5b   :  { %1650 = vmatmul.mubr.bf16.vlgmr.msra.gmra.mrb[0].mxu1 %v77_v35 }
  0x5c   :  { %1658 = vmatpush3.bf16.msra.mxu1 %v2197_v41  ;;  %1653 = vmatprep.mubr.bf16.mxu1 %v78_v43 }
  0x5d   :  { %594 = vmatpush1.bf16.msra.mxu0 %v2183_v30  ;;  %1659 = vmatprep.subr.bf16.mxu1 %v2634_v40 }
  0x5e   :  { %595 = vmatprep.subr.bf16.mxu0 %v2188_v34 }
  0x60   :  { %300 = vmatmul.mubr.bf16.gmra.mrb[4].mxu0 %v77_v35  ;;  %1660 = vmatpush3.bf16.msra.mxu1 %v2207_v45 }
  0x61   :  { %596 = vmatpush1.bf16.msra.mxu0 %v2191_v36  ;;  %309 = vmatprep.mubr.bf16.mxu0 %v2632_v0 }
  0x62   :  { %597 = vmatprep.subr.bf16.mxu0 %v2194_v37  ;;  %1661 = vmatprep.subr.bf16.mxu1 %v2634_v40 }
  0x63   :  { %1654 = vmatmul.mubr.bf16.gmra.mrb[4].mxu1 %v79_v51 }
  0x64   :  { %1662 = vmatpush3.bf16.msra.mxu1 %v2217_v50  ;;  %1673 = vmatprep.mubr.msk.bf16.mxu1 %vm2097_vm0, %v2634_v40 }
  0x65   :  { %598 = vmatpush1.bf16.msra.mxu0 %v2200_v42  ;;  %1663 = vmatprep.subr.bf16.mxu1 %v2634_v40 }
  0x66   :  { %599 = vmatprep.subr.bf16.mxu0 %v2204_v44 }
  0x68   :  { %310 = vmatmul.mubr.bf16.gmra.mrb[8].mxu0 %v78_v43  ;;  %1664 = vmatpush3.bf16.msra.mxu1 %v2228_v54 }
  0x69   :  { %600 = vmatpush1.bf16.msra.mxu0 %v2211_v46  ;;  %319 = vmatprep.mubr.bf16.mxu0 %v2632_v0 }
  0x6a   :  { %601 = vmatprep.subr.bf16.mxu0 %v2214_v49  ;;  %1665 = vmatprep.subr.bf16.mxu1 %v2634_v40 }
  0x6c   :  { %1666 = vmatpush3.bf16.msra.mxu1 %v2240_v57 }
  0x6d   :  { %602 = vmatpush1.bf16.msra.mxu0 %v2221_v52  ;;  %1667 = vmatprep.subr.bf16.mxu1 %v2634_v40 }
  0x6e   :  { %603 = vmatprep.subr.bf16.mxu0 %v2225_v53 }
  0x70   :  { %320 = vmatmul.mubr.bf16.gmra.mrb[12].mxu0 %v79_v51  ;;  %1668 = vmatpush3.bf16.msra.mxu1 %v2249_v59 }
  0x71   :  { %604 = vmatpush1.bf16.msra.mxu0 %v2234_v55  ;;  %623 = vmatprep.mubr.bf16.mxu0 %v2632_v0 }
  0x72   :  { %605 = vmatprep.subr.bf16.mxu0 %v2237_v56  ;;  %1669 = vmatprep.subr.bf16.mxu1 %v2634_v40 }
  0x74   :  { %1670 = vmatpush3.bf16.msra.mxu1 %v2255_v60 }
  0x75   :  { %606 = vmatpush1.bf16.msra.mxu0 %v2244_v58  ;;  %1671 = vmatprep.subr.bf16.mxu1 %v2634_v40 }
  0x76   :  { %700 = vmatprep.subr.bf16.mxu0 %v2176_v26 }
  0x78   :  { %624 = vmatmul.mubr.bf16.vlgmr.msra.gmra.mrb[16].mxu0 %v2098_v61  ;;  %1672 = vmatpush3.bf16.msra.mxu1 %v2262_v62 }
  0x79   :  { %701 = vmatpush1.bf16.msra.mxu0 %v2178_v28  ;;  %732 = vmatprep.mubr.bf16.mxu0 %v2632_v0 }
  0x7a   :  { %702 = vmatprep.subr.bf16.mxu0 %v2181_v29  ;;  %1677 = vmatprep.subr.bf16.mxu1 %v2634_v40 }
  0x7b   :  { %1674 = vmatmul.mubr.bf16.vlgmr.msra.gmra.mrb[8].mxu1 %v2098_v61 }
  0x7c   :  { %1678 = vmatpush3.bf16.msra.mxu1 %v2197_v41  ;;  %1693 = vmatprep.mubr.msk.bf16.mxu1 %vm2097_vm0, %v2634_v40 }
  0x7d   :  { %703 = vmatpush1.bf16.msra.mxu0 %v2183_v30  ;;  %1679 = vmatprep.subr.bf16.mxu1 %v2634_v40 }
  0x7e   :  { %704 = vmatprep.subr.bf16.mxu0 %v2188_v34 }
  0x80   :  { %1680 = vmatpush3.bf16.msra.mxu1 %v2207_v45 }
  0x81   :  { %705 = vmatpush1.bf16.msra.mxu0 %v2191_v36  ;;  %1681 = vmatprep.subr.bf16.mxu1 %v2634_v40 }
  0x82   :  { %706 = vmatprep.subr.bf16.mxu0 %v2194_v37 }
  0x84   :  { %1682 = vmatpush3.bf16.msra.mxu1 %v2217_v50 }
  0x85   :  { %707 = vmatpush1.bf16.msra.mxu0 %v2200_v42  ;;  %1683 = vmatprep.subr.bf16.mxu1 %v2634_v40 }
  0x86   :  { %708 = vmatprep.subr.bf16.mxu0 %v2204_v44 }
  0x88   :  { %1684 = vmatpush3.bf16.msra.mxu1 %v2228_v54 }
  0x89   :  { %709 = vmatpush1.bf16.msra.mxu0 %v2211_v46  ;;  %1685 = vmatprep.subr.bf16.mxu1 %v2634_v40 }
  0x8a   :  { %710 = vmatprep.subr.bf16.mxu0 %v2214_v49 }
  0x8c   :  { %1686 = vmatpush3.bf16.msra.mxu1 %v2240_v57 }
  0x8d   :  { %711 = vmatpush1.bf16.msra.mxu0 %v2221_v52  ;;  %1687 = vmatprep.subr.bf16.mxu1 %v2634_v40 }
  0x8e   :  { %712 = vmatprep.subr.bf16.mxu0 %v2225_v53 }
  0x90   :  { %1688 = vmatpush3.bf16.msra.mxu1 %v2249_v59 }
  0x91   :  { %713 = vmatpush1.bf16.msra.mxu0 %v2234_v55  ;;  %1689 = vmatprep.subr.bf16.mxu1 %v2634_v40 }
  0x92   :  { %714 = vmatprep.subr.bf16.mxu0 %v2237_v56 }
  0x94   :  { %1690 = vmatpush3.bf16.msra.mxu1 %v2255_v60 }
  0x95   :  { %715 = vmatpush1.bf16.msra.mxu0 %v2244_v58  ;;  %1691 = vmatprep.subr.bf16.mxu1 %v2634_v40 }
  0x96   :  { %810 = vmatprep.subr.bf16.mxu0 %v2176_v26 }
  0x98   :  { %1692 = vmatpush3.bf16.msra.mxu1 %v2262_v62 }
  0x99   :  { %1697 = vmatprep.subr.bf16.mxu1 %v2634_v40 }
 0x12b   :  { %v291_v5 = vpop.f32.mrb[0].mxu0 }
 0x12c   :  { %v293_v7 = vpop.f32.mrb[1].mxu0 }
 0x12d   :  { %v295_v9 = vpop.f32.mrb[2].mxu0 }
 0x12e   :  { %v2302_v10 = vadd.f32 %v295_v9, %v117_v6  ;;  %v297_v11 = vpop.f32.mrb[3].mxu0  ;;  %v1651_v20 = vpop.f32.mrb[0].mxu1 }
 0x12f   :  { %v2304_v13 = vadd.f32 %v297_v11, %v121_v8  ;;  %v2315_v23 = vadd.f32 %v1651_v20, %v2306_v14  ;;  %v364_v24 = vpop.f32.mrb[1].mxu1 }
 0x130   :  { %v1652_v27 = vpop.f32.mrb[2].mxu1 }
 0x131   :  { %v2320_v31 = vadd.f32 %v1652_v27, %v2306_v14  ;;  %v367_v32 = vpop.f32.mrb[3].mxu1 }
 0x132   :  { %v2323_v33 = vadd.f32 %v367_v32, %v2306_v14 }
 0x133   :  { %v301_v15 = vpop.f32.mrb[4].mxu0 }
 0x134   :  { %v2308_v16 = vadd.f32 %v301_v15, %v117_v6  ;;  %v303_v17 = vpop.f32.mrb[5].mxu0 }
 0x135   :  { %v2310_v18 = vadd.f32 %v303_v17, %v121_v8  ;;  %v305_v19 = vpop.f32.mrb[6].mxu0 }
 0x136   :  { %v2312_v21 = vadd.f32 %v305_v19, %v117_v6  ;;  %v307_v22 = vpop.f32.mrb[7].mxu0  ;;  %v1655_v48 = vpop.f32.mrb[4].mxu1 }
 0x137   :  { %v2317_v25 = vadd.f32 %v307_v22, %v121_v8  ;;  %v2332_v63 = vadd.f32 %v1655_v48, %v2306_v14  ;;  %v380_v1 = vpop.f32.mrb[5].mxu1 }
 0x138   :  { %v2337_v3 = vadd.f32 %v380_v1, %v2306_v14  ;;  %v1656_v4 = vpop.f32.mrb[6].mxu1 }
 0x139   :  { %2636 = vst [vmem:[#allocation14_spill] sm:$0xff] %v2332_v63  ;;  %v2340_v9 = vadd.f32 %v1656_v4, %v2306_v14  ;;  %v383_v11 = vpop.f32.mrb[7].mxu1 }
 0x13a   :  { %v2343_v12 = vadd.f32 %v383_v11, %v2306_v14 }
 0x13b   :  { %v311_v35 = vpop.f32.mrb[8].mxu0  ;;  %2637 = vst [vmem:[#allocation15_spill] sm:$0xff] %v2340_v9 }
 0x13c   :  { %v2325_v38 = vadd.f32 %v311_v35, %v117_v6  ;;  %v313_v39 = vpop.f32.mrb[9].mxu0 }
 0x13d   :  { %v2327_v43 = vadd.f32 %v313_v39, %v121_v8  ;;  %v315_v47 = vpop.f32.mrb[10].mxu0  ;;  %v292_v39 = vadd.f32 %v291_v5, %v117_v6  ;;  %v2356_v5 = vld [vmem:[%s2630_s4] ss:$0 sm:$0xff]  ;;  %s2099_s4 = smov [#allocation10]  }
 0x13e   :  { %v2329_v51 = vadd.f32 %v315_v47, %v117_v6  ;;  %v317_v61 = vpop.f32.mrb[11].mxu0  ;;  %v294_v47 = vadd.f32 %v293_v7, %v121_v8  ;;  %s1471_s8 = sshll.u32 %s2099_s4, 4  ;;  %s1472_s8 = int_to_ptr.vmem [resolvable:$true] %s1471_s8 }
 0x13f   :  { %v2334_v2 = vadd.f32 %v317_v61, %v121_v8  ;;  %s2060_s9 = scalar_lea.vmem %s1472_s8, 1024  ;;  %p2065_p11 = scmp.lt.s32.totalorder %s1472_s8, %s1472_s8 }
 0x140   :  { %p2061_p10 = scmp.ne.s32.totalorder %s1472_s8, %s2060_s9  ;;  %p2066_p12 = scmp.lt.s32.totalorder %s2060_s9, %s2060_s9 }
 0x142   :  { %p2067_p13 = por %p2066_p12, %p2065_p11 }
 0x143   :  { %v321_v15 = vpop.f32.mrb[12].mxu0 }
 0x144   :  { %v2345_v17 = vadd.f32 %v321_v15, %v117_v6  ;;  %v323_v19 = vpop.f32.mrb[13].mxu0  ;;  %p2068_p0 = pnand %p2067_p13, %p2061_p10 }
 0x145   :  { %v2347_v20 = vadd.f32 %v323_v19, %v121_v8  ;;  %v325_v22 = vpop.f32.mrb[14].mxu0 }
 0x146   :  { %v2349_v27 = vadd.f32 %v325_v22, %v117_v6  ;;  %v327_v32 = vpop.f32.mrb[15].mxu0 }
 0x147   :  { %2638 = vst [vmem:[#allocation16_spill] sm:$0xff] %v2347_v20  ;;  %v2351_v35 = vadd.f32 %v327_v32, %v121_v8 }
 0x148   :  { %2639 = vst [vmem:[#allocation17_spill] sm:$0xff] %v2349_v27 }
 0x14b   :  { %v625_v48 = vpop.f32.mrb[16].mxu0 }
 0x14c   :  { %v672_v61 = vadd.f32 %v625_v48, %v292_v39  ;;  %v627_v1 = vpop.f32.mrb[17].mxu0 }
 0x14d   :  { %v679_v4 = vadd.f32 %v627_v1, %v294_v47  ;;  %v629_v11 = vpop.f32.mrb[18].mxu0 }
 0x14e   :  { %v1533_v0 = vmul.f32 -1.442695, %v672_v61  ;;  %v630_v40 = vpop.f32.mrb[19].mxu0  ;;  %v666_v9 = vpop.f32.mrb[8].mxu1 }
 0x14f   :  { %v1534_v15 = vmul.f32 -1.442695, %v679_v4  ;;  %v1675_v19 = vpop.f32.mrb[9].mxu1  ;;  %v686_v7 = vadd.f32 %v2356_v5, %v666_v9 }
 0x150   :  { %1893 = vpow2.f32 %v1533_v0  ;;  %v669_v63 = vpop.f32.mrb[10].mxu1  ;;  %v365_v0 = vadd.f32 %v364_v24, %v2306_v14  ;;  %v2640_v14 = vmov 0.0   ;;  %v2641_v24 = vmov 0  }
 0x151   :  { %1895 = vpow2.f32 %v1534_v15  ;;  %v1676_v22 = vpop.f32.mrb[11].mxu1 }
 0x15a   :  { %v1894_v27 = vpop.eup %1893 }
 0x15b   :  { %v676_v20 = vadd.f32 1.0, %v1894_v27  ;;  %v1896_v32 = vpop.eup %1895 }
 0x15c   :  { %v683_v6 = vadd.f32 1.0, %v1896_v32 }
 0x15d   :  { %1897 = vrcp.f32 %v676_v20 }
 0x15e   :  { %1899 = vrcp.f32 %v683_v6 }
 0x167   :  { %v1898_v40 = vpop.eup %1897 }
 0x168   :  { %v687_v8 = vmul.f32 %v1898_v40, %v686_v7  ;;  %v1900_v63 = vpop.eup %1899 }
 0x169   :  { %v690_v47 = vsub.f32 1.0, %v1900_v63  ;;  %v692_v48 = vmul.f32 0.0, %v1900_v63 }
 0x16a   :  { %v688_v39 = vadd.f32 %v687_v8, %v365_v0 }
 0x16c   :  { %1901 = vtanh.f32 %v688_v39 }
 0x176   :  { %v1902_v27 = vpop.eup %1901 }
 0x177   :  { %v691_v20 = vmul.f32 %v1902_v27, %v690_v47 }
 0x179   :  { %v2360_v61 = vadd.f32 %v692_v48, %v691_v20 }
 0x17b   :  { %694 = vst [vmem:[#allocation10] sm:$0xff] %v2360_v61  ;;  %v699_v1 = vpack.c.bf16 %v2360_v61, %v2360_v61 }
 0x17d   :  { %733 = vmatmul.mubr.bf16.vlgmr.msra.gmra.mrb[20].mxu0 %v699_v1  ;;  %1694 = vmatmul.mubr.bf16.vlgmr.msra.gmra.mrb[12].mxu1 %v699_v1 }
 0x17e   :  { %811 = vmatpush1.bf16.msra.mxu0 %v2178_v28  ;;  %1698 = vmatpush3.bf16.msra.mxu1 %v2197_v41 }
 0x17f   :  { %812 = vmatprep.subr.bf16.mxu0 %v2181_v29  ;;  %1699 = vmatprep.subr.bf16.mxu1 %v2640_v14 }
 0x180   :  { %842 = vmatprep.mubr.bf16.mxu0 %v2641_v24  ;;  %1713 = vmatprep.mubr.msk.bf16.mxu1 %vm2097_vm0, %v2640_v14 }
 0x182   :  { %813 = vmatpush1.bf16.msra.mxu0 %v2183_v30  ;;  %1700 = vmatpush3.bf16.msra.mxu1 %v2207_v45 }
 0x183   :  { %814 = vmatprep.subr.bf16.mxu0 %v2188_v34  ;;  %1701 = vmatprep.subr.bf16.mxu1 %v2640_v14 }
 0x186   :  { %815 = vmatpush1.bf16.msra.mxu0 %v2191_v36  ;;  %1702 = vmatpush3.bf16.msra.mxu1 %v2217_v50 }
 0x187   :  { %816 = vmatprep.subr.bf16.mxu0 %v2194_v37  ;;  %1703 = vmatprep.subr.bf16.mxu1 %v2640_v14 }
 0x18a   :  { %817 = vmatpush1.bf16.msra.mxu0 %v2200_v42  ;;  %1704 = vmatpush3.bf16.msra.mxu1 %v2228_v54 }
 0x18b   :  { %818 = vmatprep.subr.bf16.mxu0 %v2204_v44  ;;  %1705 = vmatprep.subr.bf16.mxu1 %v2640_v14 }
 0x18e   :  { %819 = vmatpush1.bf16.msra.mxu0 %v2211_v46  ;;  %1706 = vmatpush3.bf16.msra.mxu1 %v2240_v57 }
 0x18f   :  { %820 = vmatprep.subr.bf16.mxu0 %v2214_v49  ;;  %1707 = vmatprep.subr.bf16.mxu1 %v2640_v14 }
 0x192   :  { %821 = vmatpush1.bf16.msra.mxu0 %v2221_v52  ;;  %1708 = vmatpush3.bf16.msra.mxu1 %v2249_v59 }
 0x193   :  { %822 = vmatprep.subr.bf16.mxu0 %v2225_v53  ;;  %1709 = vmatprep.subr.bf16.mxu1 %v2640_v14 }
 0x196   :  { %823 = vmatpush1.bf16.msra.mxu0 %v2234_v55  ;;  %1710 = vmatpush3.bf16.msra.mxu1 %v2255_v60 }
 0x197   :  { %824 = vmatprep.subr.bf16.mxu0 %v2237_v56  ;;  %1711 = vmatprep.subr.bf16.mxu1 %v2640_v14 }
 0x19a   :  { %825 = vmatpush1.bf16.msra.mxu0 %v2244_v58  ;;  %1712 = vmatpush3.bf16.msra.mxu1 %v2262_v62 }
 0x19b   :  { %920 = vmatprep.subr.bf16.mxu0 %v2176_v26  ;;  %1717 = vmatprep.subr.bf16.mxu1 %v2640_v14 }
 0x250   :  { %v734_v9 = vpop.f32.mrb[20].mxu0  ;;  %v775_v4 = vpop.f32.mrb[12].mxu1 }
 0x251   :  { %v781_v11 = vadd.f32 %v734_v9, %v2302_v10  ;;  %v736_v15 = vpop.f32.mrb[21].mxu0  ;;  %v1695_v19 = vpop.f32.mrb[13].mxu1  ;;  %v795_v20 = vadd.f32 %v2356_v5, %v775_v4 }
 0x252   :  { %v788_v22 = vadd.f32 %v736_v15, %v2304_v13  ;;  %v738_v32 = vpop.f32.mrb[22].mxu0  ;;  %v778_v6 = vpop.f32.mrb[14].mxu1 }
 0x253   :  { %v1535_v7 = vmul.f32 -1.442695, %v781_v11  ;;  %v739_v40 = vpop.f32.mrb[23].mxu0  ;;  %v1696_v0 = vpop.f32.mrb[15].mxu1 }
 0x254   :  { %v1536_v8 = vmul.f32 -1.442695, %v788_v22 }
 0x255   :  { %1903 = vpow2.f32 %v1535_v7 }
 0x256   :  { %1905 = vpow2.f32 %v1536_v8 }
 0x25f   :  { %v1904_v39 = vpop.eup %1903 }
 0x260   :  { %v785_v63 = vadd.f32 1.0, %v1904_v39  ;;  %v1906_v47 = vpop.eup %1905 }
 0x261   :  { %v792_v27 = vadd.f32 1.0, %v1906_v47 }
 0x262   :  { %1907 = vrcp.f32 %v785_v63 }
 0x263   :  { %1909 = vrcp.f32 %v792_v27 }
 0x26c   :  { %v1908_v10 = vpop.eup %1907 }
 0x26d   :  { %v796_v48 = vmul.f32 %v1908_v10, %v795_v20  ;;  %v1910_v1 = vpop.eup %1909 }
 0x26e   :  { %v799_v9 = vsub.f32 1.0, %v1910_v1  ;;  %v801_v19 = vmul.f32 %v1910_v1, %v2360_v61 }
 0x26f   :  { %v797_v13 = vadd.f32 %v796_v48, %v2323_v33 }
 0x271   :  { %1911 = vtanh.f32 %v797_v13 }
 0x27b   :  { %v1912_v11 = vpop.eup %1911 }
 0x27c   :  { %v800_v15 = vmul.f32 %v1912_v11, %v799_v9 }
 0x27e   :  { %v2405_v22 = vadd.f32 %v801_v19, %v800_v15 }
 0x280   :  { %804 = vst [vmem:[#allocation10 + $0x8] sm:$0xff] %v2405_v22  ;;  %v809_v32 = vpack.c.bf16 %v2405_v22, %v2405_v22 }
 0x282   :  { %843 = vmatmul.mubr.bf16.vlgmr.msra.gmra.mrb[24].mxu0 %v809_v32  ;;  %1714 = vmatmul.mubr.bf16.vlgmr.msra.gmra.mrb[16].mxu1 %v809_v32 }
 0x283   :  { %921 = vmatpush1.bf16.msra.mxu0 %v2178_v28  ;;  %1718 = vmatpush3.bf16.msra.mxu1 %v2197_v41 }
 0x284   :  { %922 = vmatprep.subr.bf16.mxu0 %v2181_v29  ;;  %1719 = vmatprep.subr.bf16.mxu1 %v2640_v14 }
 0x285   :  { %952 = vmatprep.mubr.bf16.mxu0 %v2641_v24  ;;  %1733 = vmatprep.mubr.msk.bf16.mxu1 %vm2097_vm0, %v2640_v14 }
 0x287   :  { %923 = vmatpush1.bf16.msra.mxu0 %v2183_v30  ;;  %1720 = vmatpush3.bf16.msra.mxu1 %v2207_v45 }
 0x288   :  { %924 = vmatprep.subr.bf16.mxu0 %v2188_v34  ;;  %1721 = vmatprep.subr.bf16.mxu1 %v2640_v14 }
 0x28b   :  { %925 = vmatpush1.bf16.msra.mxu0 %v2191_v36  ;;  %1722 = vmatpush3.bf16.msra.mxu1 %v2217_v50 }
 0x28c   :  { %926 = vmatprep.subr.bf16.mxu0 %v2194_v37  ;;  %1723 = vmatprep.subr.bf16.mxu1 %v2640_v14 }
 0x28f   :  { %927 = vmatpush1.bf16.msra.mxu0 %v2200_v42  ;;  %1724 = vmatpush3.bf16.msra.mxu1 %v2228_v54 }
 0x290   :  { %928 = vmatprep.subr.bf16.mxu0 %v2204_v44  ;;  %1725 = vmatprep.subr.bf16.mxu1 %v2640_v14 }
 0x293   :  { %929 = vmatpush1.bf16.msra.mxu0 %v2211_v46  ;;  %1726 = vmatpush3.bf16.msra.mxu1 %v2240_v57 }
 0x294   :  { %930 = vmatprep.subr.bf16.mxu0 %v2214_v49  ;;  %1727 = vmatprep.subr.bf16.mxu1 %v2640_v14 }
 0x297   :  { %931 = vmatpush1.bf16.msra.mxu0 %v2221_v52  ;;  %1728 = vmatpush3.bf16.msra.mxu1 %v2249_v59 }
 0x298   :  { %932 = vmatprep.subr.bf16.mxu0 %v2225_v53  ;;  %1729 = vmatprep.subr.bf16.mxu1 %v2640_v14 }
 0x29b   :  { %933 = vmatpush1.bf16.msra.mxu0 %v2234_v55  ;;  %1730 = vmatpush3.bf16.msra.mxu1 %v2255_v60 }
 0x29c   :  { %934 = vmatprep.subr.bf16.mxu0 %v2237_v56  ;;  %1731 = vmatprep.subr.bf16.mxu1 %v2640_v14 }
 0x29f   :  { %935 = vmatpush1.bf16.msra.mxu0 %v2244_v58  ;;  %1732 = vmatpush3.bf16.msra.mxu1 %v2262_v62 }
 0x2a0   :  { %1030 = vmatprep.subr.bf16.mxu0 %v2176_v26  ;;  %1737 = vmatprep.subr.bf16.mxu1 %v2640_v14 }
 0x355   :  { %v844_v33 = vpop.f32.mrb[24].mxu0  ;;  %v885_v61 = vpop.f32.mrb[16].mxu1 }
 0x356   :  { %v891_v4 = vadd.f32 %v844_v33, %v2308_v16  ;;  %v846_v6 = vpop.f32.mrb[25].mxu0  ;;  %v1715_v7 = vpop.f32.mrb[17].mxu1  ;;  %v905_v1 = vadd.f32 %v2356_v5, %v885_v61 }
 0x357   :  { %v898_v40 = vadd.f32 %v846_v6, %v2310_v18  ;;  %v848_v0 = vpop.f32.mrb[26].mxu0  ;;  %v888_v8 = vpop.f32.mrb[18].mxu1 }
 0x358   :  { %v1537_v39 = vmul.f32 -1.442695, %v891_v4  ;;  %v849_v63 = vpop.f32.mrb[27].mxu0  ;;  %v1716_v47 = vpop.f32.mrb[19].mxu1 }
 0x359   :  { %v1538_v27 = vmul.f32 -1.442695, %v898_v40 }
 0x35a   :  { %1913 = vpow2.f32 %v1537_v39 }
 0x35b   :  { %1915 = vpow2.f32 %v1538_v27 }
 0x364   :  { %v1914_v20 = vpop.eup %1913 }
 0x365   :  { %v895_v10 = vadd.f32 1.0, %v1914_v20  ;;  %v1916_v48 = vpop.eup %1915 }
 0x366   :  { %v902_v13 = vadd.f32 1.0, %v1916_v48 }
 0x367   :  { %1917 = vrcp.f32 %v895_v10 }
 0x368   :  { %1919 = vrcp.f32 %v902_v13 }
 0x371   :  { %v1918_v16 = vpop.eup %1917 }
 0x372   :  { %v906_v9 = vmul.f32 %v1918_v16, %v905_v1  ;;  %v1920_v11 = vpop.eup %1919 }
 0x373   :  { %v909_v15 = vsub.f32 1.0, %v1920_v11  ;;  %v911_v33 = vmul.f32 %v1920_v11, %v2405_v22 }
 0x374   :  { %v907_v18 = vadd.f32 %v906_v9, %v2315_v23 }
 0x376   :  { %1921 = vtanh.f32 %v907_v18 }
 0x380   :  { %v1922_v19 = vpop.eup %1921 }
 0x381   :  { %v910_v32 = vmul.f32 %v1922_v19, %v909_v15 }
 0x383   :  { %v2450_v4 = vadd.f32 %v911_v33, %v910_v32 }
 0x385   :  { %914 = vst [vmem:[#allocation10 + $0x10] sm:$0xff] %v2450_v4  ;;  %v919_v6 = vpack.c.bf16 %v2450_v4, %v2450_v4 }
 0x387   :  { %953 = vmatmul.mubr.bf16.vlgmr.msra.gmra.mrb[28].mxu0 %v919_v6  ;;  %1734 = vmatmul.mubr.bf16.vlgmr.msra.gmra.mrb[20].mxu1 %v919_v6 }
 0x388   :  { %1031 = vmatpush1.bf16.msra.mxu0 %v2178_v28  ;;  %1738 = vmatpush3.bf16.msra.mxu1 %v2197_v41 }
 0x389   :  { %1032 = vmatprep.subr.bf16.mxu0 %v2181_v29  ;;  %1739 = vmatprep.subr.bf16.mxu1 %v2640_v14 }
 0x38a   :  { %1062 = vmatprep.mubr.bf16.mxu0 %v2641_v24  ;;  %1753 = vmatprep.mubr.msk.bf16.mxu1 %vm2097_vm0, %v2640_v14 }
 0x38c   :  { %1033 = vmatpush1.bf16.msra.mxu0 %v2183_v30  ;;  %1740 = vmatpush3.bf16.msra.mxu1 %v2207_v45 }
 0x38d   :  { %1034 = vmatprep.subr.bf16.mxu0 %v2188_v34  ;;  %1741 = vmatprep.subr.bf16.mxu1 %v2640_v14 }
 0x390   :  { %1035 = vmatpush1.bf16.msra.mxu0 %v2191_v36  ;;  %1742 = vmatpush3.bf16.msra.mxu1 %v2217_v50 }
 0x391   :  { %1036 = vmatprep.subr.bf16.mxu0 %v2194_v37  ;;  %1743 = vmatprep.subr.bf16.mxu1 %v2640_v14 }
 0x394   :  { %1037 = vmatpush1.bf16.msra.mxu0 %v2200_v42  ;;  %1744 = vmatpush3.bf16.msra.mxu1 %v2228_v54 }
 0x395   :  { %1038 = vmatprep.subr.bf16.mxu0 %v2204_v44  ;;  %1745 = vmatprep.subr.bf16.mxu1 %v2640_v14 }
 0x398   :  { %1039 = vmatpush1.bf16.msra.mxu0 %v2211_v46  ;;  %1746 = vmatpush3.bf16.msra.mxu1 %v2240_v57 }
 0x399   :  { %1040 = vmatprep.subr.bf16.mxu0 %v2214_v49  ;;  %1747 = vmatprep.subr.bf16.mxu1 %v2640_v14 }
 0x39c   :  { %1041 = vmatpush1.bf16.msra.mxu0 %v2221_v52  ;;  %1748 = vmatpush3.bf16.msra.mxu1 %v2249_v59 }
 0x39d   :  { %1042 = vmatprep.subr.bf16.mxu0 %v2225_v53  ;;  %1749 = vmatprep.subr.bf16.mxu1 %v2640_v14 }
 0x3a0   :  { %1043 = vmatpush1.bf16.msra.mxu0 %v2234_v55  ;;  %1750 = vmatpush3.bf16.msra.mxu1 %v2255_v60 }
 0x3a1   :  { %1044 = vmatprep.subr.bf16.mxu0 %v2237_v56  ;;  %1751 = vmatprep.subr.bf16.mxu1 %v2640_v14 }
 0x3a4   :  { %1045 = vmatpush1.bf16.msra.mxu0 %v2244_v58  ;;  %1752 = vmatpush3.bf16.msra.mxu1 %v2262_v62 }
 0x3a5   :  { %1140 = vmatprep.subr.bf16.mxu0 %v2176_v26  ;;  %1757 = vmatprep.subr.bf16.mxu1 %v2640_v14 }
 0x45a   :  { %v954_v23 = vpop.f32.mrb[28].mxu0  ;;  %v995_v22 = vpop.f32.mrb[20].mxu1 }
 0x45b   :  { %v1001_v61 = vadd.f32 %v954_v23, %v2312_v21  ;;  %v956_v7 = vpop.f32.mrb[29].mxu0  ;;  %v1735_v40 = vpop.f32.mrb[21].mxu1  ;;  %v1015_v16 = vadd.f32 %v2356_v5, %v995_v22 }
 0x45c   :  { %v1008_v0 = vadd.f32 %v956_v7, %v2317_v25  ;;  %v958_v8 = vpop.f32.mrb[30].mxu0  ;;  %v998_v39 = vpop.f32.mrb[22].mxu1 }
 0x45d   :  { %v1539_v63 = vmul.f32 -1.442695, %v1001_v61  ;;  %v959_v47 = vpop.f32.mrb[31].mxu0  ;;  %v1736_v27 = vpop.f32.mrb[23].mxu1 }
 0x45e   :  { %v1540_v20 = vmul.f32 -1.442695, %v1008_v0 }
 0x45f   :  { %1923 = vpow2.f32 %v1539_v63 }
 0x460   :  { %1925 = vpow2.f32 %v1540_v20 }
 0x469   :  { %v1924_v10 = vpop.eup %1923 }
 0x46a   :  { %v1005_v48 = vadd.f32 1.0, %v1924_v10  ;;  %v1926_v13 = vpop.eup %1925 }
 0x46b   :  { %v1012_v1 = vadd.f32 1.0, %v1926_v13 }
 0x46c   :  { %1927 = vrcp.f32 %v1005_v48 }
 0x46d   :  { %1929 = vrcp.f32 %v1012_v1 }
 0x476   :  { %v1928_v21 = vpop.eup %1927 }
 0x477   :  { %v1016_v9 = vmul.f32 %v1928_v21, %v1015_v16  ;;  %v1930_v18 = vpop.eup %1929 }
 0x478   :  { %v1019_v11 = vsub.f32 1.0, %v1930_v18  ;;  %v1021_v32 = vmul.f32 %v1930_v18, %v2450_v4 }
 0x479   :  { %v1017_v25 = vadd.f32 %v1016_v9, %v2320_v31 }
 0x47b   :  { %1931 = vtanh.f32 %v1017_v25 }
 0x485   :  { %v1932_v15 = vpop.eup %1931 }
 0x486   :  { %v1020_v19 = vmul.f32 %v1932_v15, %v1019_v11 }
 0x488   :  { %v2495_v33 = vadd.f32 %v1021_v32, %v1020_v19 }
 0x48a   :  { %1024 = vst [vmem:[#allocation10 + $0x18] sm:$0xff] %v2495_v33  ;;  %v1029_v6 = vpack.c.bf16 %v2495_v33, %v2495_v33 }
 0x48c   :  { %1063 = vmatmul.mubr.bf16.vlgmr.msra.gmra.mrb[32].mxu0 %v1029_v6  ;;  %1754 = vmatmul.mubr.bf16.vlgmr.msra.gmra.mrb[24].mxu1 %v1029_v6 }
 0x48d   :  { %1141 = vmatpush1.bf16.msra.mxu0 %v2178_v28  ;;  %1758 = vmatpush3.bf16.msra.mxu1 %v2197_v41 }
 0x48e   :  { %1142 = vmatprep.subr.bf16.mxu0 %v2181_v29  ;;  %1759 = vmatprep.subr.bf16.mxu1 %v2640_v14 }
 0x48f   :  { %1172 = vmatprep.mubr.bf16.mxu0 %v2641_v24  ;;  %1773 = vmatprep.mubr.msk.bf16.mxu1 %vm2097_vm0, %v2640_v14 }
 0x491   :  { %1143 = vmatpush1.bf16.msra.mxu0 %v2183_v30  ;;  %1760 = vmatpush3.bf16.msra.mxu1 %v2207_v45 }
 0x492   :  { %1144 = vmatprep.subr.bf16.mxu0 %v2188_v34  ;;  %1761 = vmatprep.subr.bf16.mxu1 %v2640_v14 }
 0x495   :  { %1145 = vmatpush1.bf16.msra.mxu0 %v2191_v36  ;;  %1762 = vmatpush3.bf16.msra.mxu1 %v2217_v50 }
 0x496   :  { %1146 = vmatprep.subr.bf16.mxu0 %v2194_v37  ;;  %1763 = vmatprep.subr.bf16.mxu1 %v2640_v14 }
 0x499   :  { %1147 = vmatpush1.bf16.msra.mxu0 %v2200_v42  ;;  %1764 = vmatpush3.bf16.msra.mxu1 %v2228_v54 }
 0x49a   :  { %1148 = vmatprep.subr.bf16.mxu0 %v2204_v44  ;;  %1765 = vmatprep.subr.bf16.mxu1 %v2640_v14 }
 0x49d   :  { %1149 = vmatpush1.bf16.msra.mxu0 %v2211_v46  ;;  %1766 = vmatpush3.bf16.msra.mxu1 %v2240_v57 }
 0x49e   :  { %1150 = vmatprep.subr.bf16.mxu0 %v2214_v49  ;;  %1767 = vmatprep.subr.bf16.mxu1 %v2640_v14 }
 0x4a1   :  { %1151 = vmatpush1.bf16.msra.mxu0 %v2221_v52  ;;  %1768 = vmatpush3.bf16.msra.mxu1 %v2249_v59 }
 0x4a2   :  { %1152 = vmatprep.subr.bf16.mxu0 %v2225_v53  ;;  %1769 = vmatprep.subr.bf16.mxu1 %v2640_v14 }
 0x4a5   :  { %1153 = vmatpush1.bf16.msra.mxu0 %v2234_v55  ;;  %1770 = vmatpush3.bf16.msra.mxu1 %v2255_v60 }
 0x4a6   :  { %1154 = vmatprep.subr.bf16.mxu0 %v2237_v56  ;;  %1771 = vmatprep.subr.bf16.mxu1 %v2640_v14 }
 0x4a9   :  { %1155 = vmatpush1.bf16.msra.mxu0 %v2244_v58  ;;  %1772 = vmatpush3.bf16.msra.mxu1 %v2262_v62 }
 0x4aa   :  { %1250 = vmatprep.subr.bf16.mxu0 %v2176_v26  ;;  %1777 = vmatprep.subr.bf16.mxu1 %v2640_v14 }
 0x55f   :  { %v1064_v31 = vpop.f32.mrb[32].mxu0  ;;  %v1105_v4 = vpop.f32.mrb[24].mxu1 }
 0x560   :  { %v1111_v23 = vadd.f32 %v1064_v31, %v2325_v38  ;;  %v1066_v22 = vpop.f32.mrb[33].mxu0  ;;  %v1755_v61 = vpop.f32.mrb[25].mxu1  ;;  %v1125_v48 = vadd.f32 %v2356_v5, %v1105_v4  ;;  %v1974_v31 = vld [vmem:[#allocation9] ss:$12 sps:$4 sm:$0xff]   ;;  %v1975_v4 = vld [vmem:[#allocation9 + $0x8] ss:$12 sps:$4 sm:$0xff]  }
 0x561   :  { %v1118_v7 = vadd.f32 %v1066_v22, %v2327_v43  ;;  %v1068_v40 = vpop.f32.mrb[34].mxu0  ;;  %v1108_v0 = vpop.f32.mrb[26].mxu1  ;;  %v1978_v22 = vld [vmem:[#allocation9 + $0x20] ss:$12 sps:$4 sm:$0xff]  }
 0x562   :  { %v1541_v8 = vmul.f32 -1.442695, %v1111_v23  ;;  %v1069_v39 = vpop.f32.mrb[35].mxu0  ;;  %v1756_v63 = vpop.f32.mrb[27].mxu1  ;;  %v1977_v23 = vld [vmem:[#allocation9 + $0x18] ss:$12 sps:$4 sm:$0xff]  }
 0x563   :  { %v1542_v47 = vmul.f32 -1.442695, %v1118_v7  ;;  %v1979_v61 = vld [vmem:[#allocation9 + $0x34] ss:$12 sps:$4 sm:$0xff]   ;;  %v1980_v7 = vld [vmem:[#allocation9 + $0x30] ss:$12 sps:$4 sm:$0xff]  }
 0x564   :  { %1933 = vpow2.f32 %v1541_v8  ;;  %v1981_v40 = vld [vmem:[#allocation9 + $0x38] ss:$12 sps:$4 sm:$0xff]   ;;  %v1984_v8 = vld [vmem:[#allocation9 + $0x50] ss:$12 sps:$4 sm:$0xff]   ;;  %v1986_v63 = vld [vmem:[#allocation9 + $0x60] ss:$12 sps:$4 sm:$0xff]  }
 0x565   :  { %1935 = vpow2.f32 %v1542_v47  ;;  %v1982_v0 = vld [vmem:[#allocation9 + $0x4c] ss:$12 sps:$4 sm:$0xff]   ;;  %v1985_v39 = vld [vmem:[#allocation9 + $0x64] ss:$12 sps:$4 sm:$0xff]   ;;  %v1987_v47 = vld [vmem:[#allocation9 + $0x68] ss:$12 sps:$4 sm:$0xff]  }
 0x56e   :  { %v1934_v27 = vpop.eup %1933 }
 0x56f   :  { %v1115_v26 = vadd.f32 1.0, %v1934_v27  ;;  %v1936_v20 = vpop.eup %1935  ;;  %v1988_v27 = vld [vmem:[#allocation9 + $0x7c] ss:$12 sps:$4 sm:$0xff]  }
 0x570   :  { %v1122_v10 = vadd.f32 1.0, %v1936_v20  ;;  %v1990_v20 = vld [vmem:[#allocation9 + $0x94] ss:$12 sps:$4 sm:$0xff]  }
 0x571   :  { %1937 = vrcp.f32 %v1115_v26  ;;  %v1989_v26 = vld [vmem:[#allocation9 + $0x78] ss:$12 sps:$4 sm:$0xff]  }
 0x572   :  { %1939 = vrcp.f32 %v1122_v10  ;;  %v1991_v10 = vld [vmem:[#allocation9 + $0x90] ss:$12 sps:$4 sm:$0xff]  }
 0x57b   :  { %v1938_v38 = vpop.eup %1937 }
 0x57c   :  { %v1126_v13 = vmul.f32 %v1938_v38, %v1125_v48  ;;  %v1940_v1 = vpop.eup %1939  ;;  %v1992_v48 = vld [vmem:[#allocation9 + $0xac] ss:$12 sps:$4 sm:$0xff]   ;;  %v1993_v38 = vld [vmem:[#allocation9 + $0xa8] ss:$12 sps:$4 sm:$0xff]  }
 0x57d   :  { %v1129_v16 = vsub.f32 1.0, %v1940_v1  ;;  %v1131_v25 = vmul.f32 %v1940_v1, %v2495_v33 }
 0x57e   :  { %v1127_v43 = vadd.f32 %v1126_v13, %v2337_v3 }
 0x580   :  { %1941 = vtanh.f32 %v1127_v43 }
 0x58a   :  { %v1942_v21 = vpop.eup %1941 }
 0x58b   :  { %v1130_v9 = vmul.f32 %v1942_v21, %v1129_v16  ;;  %v2642_v21 = vld [vmem:[#allocation16_spill] sm:$0xff] }
 0x58d   :  { %v2540_v18 = vadd.f32 %v1131_v25, %v1130_v9 }
 0x58f   :  { %1134 = vst [vmem:[#allocation10 + $0x20] sm:$0xff] %v2540_v18  ;;  %v1139_v11 = vpack.c.bf16 %v2540_v18, %v2540_v18 }
 0x591   :  { %1173 = vmatmul.mubr.bf16.vlgmr.msra.gmra.mrb[36].mxu0 %v1139_v11  ;;  %1774 = vmatmul.mubr.bf16.vlgmr.msra.gmra.mrb[28].mxu1 %v1139_v11 }
 0x592   :  { %1251 = vmatpush1.bf16.msra.mxu0 %v2178_v28  ;;  %1778 = vmatpush3.bf16.msra.mxu1 %v2197_v41  ;;  %v1973_v28 = vld [vmem:[#allocation9 + $0x4] ss:$12 sps:$4 sm:$0xff]  }
 0x593   :  { %1252 = vmatprep.subr.bf16.mxu0 %v2181_v29  ;;  %1779 = vmatprep.subr.bf16.mxu1 %v2640_v14 }
 0x594   :  { %1282 = vmatprep.mubr.bf16.mxu0 %v2641_v24  ;;  %1793 = vmatprep.mubr.msk.bf16.mxu1 %vm2097_vm0, %v2640_v14 }
 0x596   :  { %1253 = vmatpush1.bf16.msra.mxu0 %v2183_v30  ;;  %1780 = vmatpush3.bf16.msra.mxu1 %v2207_v45 }
 0x597   :  { %1254 = vmatprep.subr.bf16.mxu0 %v2188_v34  ;;  %1781 = vmatprep.subr.bf16.mxu1 %v2640_v14 }
 0x59a   :  { %1255 = vmatpush1.bf16.msra.mxu0 %v2191_v36  ;;  %1782 = vmatpush3.bf16.msra.mxu1 %v2217_v50 }
 0x59b   :  { %1256 = vmatprep.subr.bf16.mxu0 %v2194_v37  ;;  %1783 = vmatprep.subr.bf16.mxu1 %v2640_v14 }
 0x59e   :  { %1257 = vmatpush1.bf16.msra.mxu0 %v2200_v42  ;;  %1784 = vmatpush3.bf16.msra.mxu1 %v2228_v54 }
 0x59f   :  { %1258 = vmatprep.subr.bf16.mxu0 %v2204_v44  ;;  %1785 = vmatprep.subr.bf16.mxu1 %v2640_v14 }
 0x5a2   :  { %1259 = vmatpush1.bf16.msra.mxu0 %v2211_v46  ;;  %1786 = vmatpush3.bf16.msra.mxu1 %v2240_v57 }
 0x5a3   :  { %1260 = vmatprep.subr.bf16.mxu0 %v2214_v49  ;;  %1787 = vmatprep.subr.bf16.mxu1 %v2640_v14 }
 0x5a6   :  { %1261 = vmatpush1.bf16.msra.mxu0 %v2221_v52  ;;  %1788 = vmatpush3.bf16.msra.mxu1 %v2249_v59 }
 0x5a7   :  { %1262 = vmatprep.subr.bf16.mxu0 %v2225_v53  ;;  %1789 = vmatprep.subr.bf16.mxu1 %v2640_v14 }
 0x5aa   :  { %1263 = vmatpush1.bf16.msra.mxu0 %v2234_v55  ;;  %1790 = vmatpush3.bf16.msra.mxu1 %v2255_v60 }
 0x5ab   :  { %1264 = vmatprep.subr.bf16.mxu0 %v2237_v56  ;;  %1791 = vmatprep.subr.bf16.mxu1 %v2640_v14 }
 0x5ae   :  { %1265 = vmatpush1.bf16.msra.mxu0 %v2244_v58  ;;  %1792 = vmatpush3.bf16.msra.mxu1 %v2262_v62 }
 0x5af   :  { %1360 = vmatprep.subr.bf16.mxu0 %v1973_v28  ;;  %1797 = vmatprep.subr.bf16.mxu1 %v2640_v14 }
 0x664   :  { %v1174_v29 = vpop.f32.mrb[36].mxu0  ;;  %v1215_v30 = vpop.f32.mrb[28].mxu1 }
 0x665   :  { %v1221_v34 = vadd.f32 %v1174_v29, %v2329_v51  ;;  %v1176_v36 = vpop.f32.mrb[37].mxu0  ;;  %v1775_v37 = vpop.f32.mrb[29].mxu1  ;;  %v1235_v56 = vadd.f32 %v2356_v5, %v1215_v30 }
 0x666   :  { %v1228_v41 = vadd.f32 %v1176_v36, %v2334_v2  ;;  %v1178_v42 = vpop.f32.mrb[38].mxu0  ;;  %v1218_v44 = vpop.f32.mrb[30].mxu1 }
 0x667   :  { %v1543_v45 = vmul.f32 -1.442695, %v1221_v34  ;;  %v1179_v46 = vpop.f32.mrb[39].mxu0  ;;  %v1776_v49 = vpop.f32.mrb[31].mxu1 }
 0x668   :  { %v1544_v50 = vmul.f32 -1.442695, %v1228_v41  ;;  %v2643_v41 = vld [vmem:[#allocation14_spill] sm:$0xff] }
 0x669   :  { %1943 = vpow2.f32 %v1543_v45 }
 0x66a   :  { %1945 = vpow2.f32 %v1544_v50 }
 0x673   :  { %v1944_v52 = vpop.eup %1943 }
 0x674   :  { %v1225_v53 = vadd.f32 1.0, %v1944_v52  ;;  %v1946_v54 = vpop.eup %1945 }
 0x675   :  { %v1232_v55 = vadd.f32 1.0, %v1946_v54 }
 0x676   :  { %1947 = vrcp.f32 %v1225_v53 }
 0x677   :  { %1949 = vrcp.f32 %v1232_v55 }
 0x680   :  { %v1948_v57 = vpop.eup %1947 }
 0x681   :  { %v1236_v58 = vmul.f32 %v1948_v57, %v1235_v56  ;;  %v1950_v2 = vpop.eup %1949  ;;  %v2644_v56 = vld [vmem:[#allocation17_spill] sm:$0xff] }
 0x682   :  { %v1239_v3 = vsub.f32 1.0, %v1950_v2  ;;  %v1241_v32 = vmul.f32 %v1950_v2, %v2540_v18 }
 0x683   :  { %v1237_v51 = vadd.f32 %v1236_v58, %v2343_v12  ;;  %v1976_v12 = vld [vmem:[#allocation9 + $0x1c] ss:$12 sps:$4 sm:$0xff]  }
 0x685   :  { %1951 = vtanh.f32 %v1237_v51 }
 0x68f   :  { %v1952_v15 = vpop.eup %1951 }
 0x690   :  { %v1240_v19 = vmul.f32 %v1952_v15, %v1239_v3 }
 0x692   :  { %v2584_v33 = vadd.f32 %v1241_v32, %v1240_v19 }
 0x694   :  { %1244 = vst [vmem:[#allocation10 + $0x28] sm:$0xff] %v2584_v33  ;;  %v1249_v6 = vpack.c.bf16 %v2584_v33, %v2584_v33 }
 0x696   :  { %1283 = vmatmul.mubr.bf16.vlgmr.msra.gmra.mrb[40].mxu0 %v1249_v6  ;;  %1794 = vmatmul.mubr.bf16.vlgmr.msra.gmra.mrb[32].mxu1 %v1249_v6 }
 0x697   :  { %1361 = vmatpush1.bf16.msra.mxu0 %v1974_v31  ;;  %1798 = vmatpush3.bf16.msra.mxu1 %v1975_v4 }
 0x698   :  { %1362 = vmatprep.subr.bf16.mxu0 %v1976_v12  ;;  %1799 = vmatprep.subr.bf16.mxu1 %v2640_v14 }
 0x699   :  { %1392 = vmatprep.mubr.bf16.mxu0 %v2641_v24  ;;  %1813 = vmatprep.mubr.msk.bf16.mxu1 %vm2097_vm0, %v2640_v14  ;;  %v1983_v24 = vld [vmem:[#allocation9 + $0x48] ss:$12 sps:$4 sm:$0xff]  }
 0x69b   :  { %1363 = vmatpush1.bf16.msra.mxu0 %v1977_v23  ;;  %1800 = vmatpush3.bf16.msra.mxu1 %v1978_v22 }
 0x69c   :  { %1364 = vmatprep.subr.bf16.mxu0 %v1979_v61  ;;  %1801 = vmatprep.subr.bf16.mxu1 %v2640_v14 }
 0x69f   :  { %1365 = vmatpush1.bf16.msra.mxu0 %v1980_v7  ;;  %1802 = vmatpush3.bf16.msra.mxu1 %v1981_v40  ;;  %v2645_v40 = vld [vmem:[#allocation15_spill] sm:$0xff] }
 0x6a0   :  { %1366 = vmatprep.subr.bf16.mxu0 %v1982_v0  ;;  %1803 = vmatprep.subr.bf16.mxu1 %v2640_v14 }
 0x6a3   :  { %1367 = vmatpush1.bf16.msra.mxu0 %v1983_v24  ;;  %1804 = vmatpush3.bf16.msra.mxu1 %v1984_v8 }
 0x6a4   :  { %1368 = vmatprep.subr.bf16.mxu0 %v1985_v39  ;;  %1805 = vmatprep.subr.bf16.mxu1 %v2640_v14 }
 0x6a7   :  { %1369 = vmatpush1.bf16.msra.mxu0 %v1986_v63  ;;  %1806 = vmatpush3.bf16.msra.mxu1 %v1987_v47 }
 0x6a8   :  { %1370 = vmatprep.subr.bf16.mxu0 %v1988_v27  ;;  %1807 = vmatprep.subr.bf16.mxu1 %v2640_v14 }
 0x6ab   :  { %1371 = vmatpush1.bf16.msra.mxu0 %v1989_v26  ;;  %1808 = vmatpush3.bf16.msra.mxu1 %v2249_v59 }
 0x6ac   :  { %1372 = vmatprep.subr.bf16.mxu0 %v1990_v20  ;;  %1809 = vmatprep.subr.bf16.mxu1 %v2640_v14 }
 0x6af   :  { %1373 = vmatpush1.bf16.msra.mxu0 %v1991_v10  ;;  %1810 = vmatpush3.bf16.msra.mxu1 %v2255_v60 }
 0x6b0   :  { %1374 = vmatprep.subr.bf16.mxu0 %v1992_v48  ;;  %1811 = vmatprep.subr.bf16.mxu1 %v2640_v14 }
 0x6b3   :  { %1375 = vmatpush1.bf16.msra.mxu0 %v1993_v38  ;;  %1812 = vmatpush3.bf16.msra.mxu1 %v2262_v62 }
 0x769   :  { %v1284_v13 = vpop.f32.mrb[40].mxu0  ;;  %v1325_v43 = vpop.f32.mrb[32].mxu1 }
 0x76a   :  { %v1331_v59 = vadd.f32 %v1284_v13, %v2345_v17  ;;  %v1286_v1 = vpop.f32.mrb[41].mxu0  ;;  %v1795_v16 = vpop.f32.mrb[33].mxu1  ;;  %v1345_v36 = vadd.f32 %v2356_v5, %v1325_v43 }
 0x76b   :  { %v1338_v9 = vadd.f32 %v1286_v1, %v2642_v21  ;;  %v1288_v25 = vpop.f32.mrb[42].mxu0  ;;  %v1328_v18 = vpop.f32.mrb[34].mxu1 }
 0x76c   :  { %v1545_v11 = vmul.f32 -1.442695, %v1331_v59  ;;  %v1289_v60 = vpop.f32.mrb[43].mxu0  ;;  %v1796_v28 = vpop.f32.mrb[35].mxu1 }
 0x76d   :  { %v1546_v29 = vmul.f32 -1.442695, %v1338_v9 }
 0x76e   :  { %1953 = vpow2.f32 %v1545_v11 }
 0x76f   :  { %1955 = vpow2.f32 %v1546_v29 }
 0x778   :  { %v1954_v14 = vpop.eup %1953 }
 0x779   :  { %v1335_v30 = vadd.f32 1.0, %v1954_v14  ;;  %v1956_v62 = vpop.eup %1955 }
 0x77a   :  { %v1342_v34 = vadd.f32 1.0, %v1956_v62 }
 0x77b   :  { %1957 = vrcp.f32 %v1335_v30 }
 0x77c   :  { %1959 = vrcp.f32 %v1342_v34 }
 0x785   :  { %v1958_v17 = vpop.eup %1957 }
 0x786   :  { %v1346_v37 = vmul.f32 %v1958_v17, %v1345_v36  ;;  %v1960_v44 = vpop.eup %1959 }
 0x787   :  { %v1349_v45 = vsub.f32 1.0, %v1960_v44  ;;  %v1351_v50 = vmul.f32 %v1960_v44, %v2584_v33 }
 0x788   :  { %v1347_v42 = vadd.f32 %v1346_v37, %v2643_v41 }
 0x78a   :  { %1961 = vtanh.f32 %v1347_v42 }
 0x794   :  { %v1962_v46 = vpop.eup %1961 }
 0x795   :  { %v1350_v49 = vmul.f32 %v1962_v46, %v1349_v45 }
 0x797   :  { %v1352_v52 = vadd.f32 %v1351_v50, %v1350_v49 }
 0x799   :  { %1354 = vst [vmem:[#allocation10 + $0x30] sm:$0xff] %v1352_v52  ;;  %v1359_v53 = vpack.c.bf16 %v1352_v52, %v1352_v52 }
 0x79b   :  { %1393 = vmatmul.mubr.bf16.vlgmr.msra.gmra.mrb[44].mxu0 %v1359_v53  ;;  %1814 = vmatmul.mubr.bf16.vlgmr.msra.gmra.mrb[36].mxu1 %v1359_v53 }
 0x86e   :  { %v1394_v54 = vpop.f32.mrb[44].mxu0  ;;  %v1435_v55 = vpop.f32.mrb[36].mxu1 }
 0x86f   :  { %v1441_v57 = vadd.f32 %v1394_v54, %v2644_v56  ;;  %v1396_v58 = vpop.f32.mrb[45].mxu0  ;;  %v1815_v51 = vpop.f32.mrb[37].mxu1  ;;  %v1455_v22 = vadd.f32 %v2356_v5, %v1435_v55 }
 0x870   :  { %v1448_v2 = vadd.f32 %v1396_v58, %v2351_v35  ;;  %v1398_v3 = vpop.f32.mrb[46].mxu0  ;;  %v1438_v15 = vpop.f32.mrb[38].mxu1 }
 0x871   :  { %v1547_v19 = vmul.f32 -1.442695, %v1441_v57  ;;  %v1399_v32 = vpop.f32.mrb[47].mxu0  ;;  %v1816_v6 = vpop.f32.mrb[39].mxu1 }
 0x872   :  { %v1548_v33 = vmul.f32 -1.442695, %v1448_v2 }
 0x873   :  { %1963 = vpow2.f32 %v1547_v19 }
 0x874   :  { %1965 = vpow2.f32 %v1548_v33 }
 0x87d   :  { %v1964_v31 = vpop.eup %1963 }
 0x87e   :  { %v1445_v4 = vadd.f32 1.0, %v1964_v31  ;;  %v1966_v12 = vpop.eup %1965 }
 0x87f   :  { %v1452_v23 = vadd.f32 1.0, %v1966_v12 }
 0x880   :  { %1967 = vrcp.f32 %v1445_v4 }
 0x881   :  { %1969 = vrcp.f32 %v1452_v23 }
 0x88a   :  { %v1968_v61 = vpop.eup %1967 }
 0x88b   :  { %v1456_v7 = vmul.f32 %v1968_v61, %v1455_v22  ;;  %v1970_v0 = vpop.eup %1969 }
 0x88c   :  { %v1459_v24 = vsub.f32 1.0, %v1970_v0  ;;  %v1461_v63 = vmul.f32 %v1970_v0, %v1352_v52 }
 0x88d   :  { %v1457_v35 = vadd.f32 %v1456_v7, %v2645_v40 }
 0x88f   :  { %1971 = vtanh.f32 %v1457_v35 }
 0x899   :  { %v1972_v8 = vpop.eup %1971 }
 0x89a   :  { %v1460_v39 = vmul.f32 %v1972_v8, %v1459_v24 }
 0x89c   :  { %v1462_v47 = vadd.f32 %v1461_v63, %v1460_v39 }
 0x89e   :  { %1464 = vst [vmem:[#allocation10 + $0x38] sm:$0xff] %v1462_v47 }
 0x89f   :  { %2071 = shalt.err (!%p2068_p0)
}
 0x8a0   :  { %s2072_s12 = scalar_lea.hbm %s2631_s5, 1024 }
 0x8a1   :  { %p2073_p1 = scmp.ne.s32.totalorder %s2631_s5, %s2072_s12  ;;  %p2076_p2 = scmp.lt.u32.totalorder %s2072_s12, %s2631_s5 }
 0x8a3   :  { %p2078_p3 = pnand %p2076_p2, %p2073_p1 }
 0x8a5   :  { %2081 = shalt.err (!%p2078_p3)
}
 0x8a6   :  { %1477 = dma.vmem_to_hbm [thread:$0]  %s1472_s8, 1024, %s2631_s5, [#allocation6], %s2092_s1, %s2092_s1, %s2093_s17  }
 0x8a7   :  { %2086 = dma.done.wait [#allocation6], 1024  }
 0x8a8   :  { %2087 = vsyncadd [#allocation6], 4294966272 }
 0x8a9   :  { %1481 = vsyncpa [#allocation5], 1 }
 0x8aa   :  { %1482 = vsyncpa [#allocation8], 1 }
 0x8ab   :  { %1483 = vsyncpa [#allocation6], 1 }

</bundles_post_ra>
